<compile_context>
chip_gen: v6e
topology: v6e:2x2x1
jax: 0.10.0
libtpu: 0.0.40
codegen_flags: <defaults>
</compile_context>

<pallas_src>
import functools
import math

import jax
import jax.numpy as jnp
from jax.experimental import pallas as pl
from jax.experimental.pallas import tpu as pltpu


def _mha_kernel(q_ref, k_ref, v_ref, o_ref, *, num_heads, dh, dvh):
    # q_ref/k_ref: (Bblk, N, D), v_ref: (Bblk, N, Dv), o_ref: (Bblk, N, Dv)
    scale = 1.0 / math.sqrt(dh)

    q = q_ref[...]
    k = k_ref[...]
    v = v_ref[...]

    outs = []
    for h in range(num_heads):      # static unrolled loop over heads (small H)
        qh = q[:, :, h * dh:(h + 1) * dh]
        kh = k[:, :, h * dh:(h + 1) * dh]
        vh = v[:, :, h * dvh:(h + 1) * dvh]

        # scores: (Bblk, N, N); contract on the last dim of both -> no explicit k.T.
        # Scale is applied after the matmul (same order as the PyTorch module).
        s = jnp.einsum("bnd,bmd->bnm", qh, kh,
                       preferred_element_type=jnp.float32) * scale

        # numerically-stable softmax over the last axis (matches F.softmax(dim=-1)):
        # exact division, no approximate reciprocal.
        m = jnp.max(s, axis=-1, keepdims=True)
        p = jnp.exp(s - m)
        p = p / jnp.sum(p, axis=-1, keepdims=True)

        # weighted sum of values: (Bblk, N, dvh); MXU operands in v's native dtype
        oh = jnp.einsum("bnm,bmd->bnd", p.astype(vh.dtype), vh,
                        preferred_element_type=jnp.float32)
        outs.append(oh)

    # single lane-dense (Bblk, N, Dv) store (heads concatenated along the last axis)
    o_ref[...] = jnp.concatenate(outs, axis=-1).astype(o_ref.dtype)


def multi_head_attention2(query, key, value, num_heads, block_b=16):
    """Pallas implementation of MultiHeadAttention2.forward.

    query, key:  (T, K, N, D)
    value:       (T, K, N, Dv)
    returns:     (T, K, N, Dv)
    """
    T, K, N, D = query.shape
    Dv = value.shape[-1]
    H = num_heads
    dh = D // H
    dvh = Dv // H
    B = T * K

    # pure reshapes (no transposes, no extra HBM round-trips)
    qb = query.reshape(B, N, D)
    kb = key.reshape(B, N, D)
    vb = value.reshape(B, N, Dv)

    bb = min(block_b, B)
    Bp = ((B + bb - 1) // bb) * bb
    if Bp != B:
        pad = Bp - B
        qb = jnp.pad(qb, ((0, pad), (0, 0), (0, 0)))
        kb = jnp.pad(kb, ((0, pad), (0, 0), (0, 0)))
        vb = jnp.pad(vb, ((0, pad), (0, 0), (0, 0)))

    kernel = functools.partial(_mha_kernel, num_heads=H, dh=dh, dvh=dvh)

    out = pl.pallas_call(
        kernel,
        out_shape=jax.ShapeDtypeStruct((Bp, N, Dv), query.dtype),
        grid_spec=pltpu.PrefetchScalarGridSpec(
            num_scalar_prefetch=0,
            grid=(Bp // bb,),
            in_specs=[
                pl.BlockSpec((bb, N, D), lambda b: (b, 0, 0)),
                pl.BlockSpec((bb, N, D), lambda b: (b, 0, 0)),
                pl.BlockSpec((bb, N, Dv), lambda b: (b, 0, 0)),
            ],
            out_specs=pl.BlockSpec((bb, N, Dv), lambda b: (b, 0, 0)),
        ),
        compiler_params=pltpu.CompilerParams(
            # batch-block axis is embarrassingly parallel -> megacore sharding
            dimension_semantics=("parallel",),
        ),
    )(qb, kb, vb)

    if Bp != B:
        out = out[:B]
    return out.reshape(T, K, N, Dv)
    # TODO(synk): for large N (>~1K) switch the in-kernel body to a KV-tiled
    # online-softmax (flash) structure to bound the (N, N) f32 score tile.


def _reference(query, key, value, num_heads):
    # Mirrors the PyTorch module op-for-op (reshape -> transpose -> q@k.T*scale ->
    # softmax -> @v -> transpose -> reshape).
    T, K, N, D = query.shape
    Dv = value.shape[-1]
    H = num_heads
    q = jnp.transpose(query.reshape(T, K, N, H, D // H), (0, 1, 3, 2, 4))
    k = jnp.transpose(key.reshape(T, K, N, H, D // H), (0, 1, 3, 2, 4))
    v = jnp.transpose(value.reshape(T, K, N, H, Dv // H), (0, 1, 3, 2, 4))
    att = jnp.einsum("tkhnd,tkhmd->tkhnm", q, k) * (1.0 / math.sqrt(D // H))
    att = jax.nn.softmax(att, axis=-1)
    y = jnp.einsum("tkhnm,tkhmd->tkhnd", att, v)
    y = jnp.transpose(y, (0, 1, 3, 2, 4)).reshape(T, K, N, Dv)
    return y


if __name__ == "__main__":
    # Small shapes consistent with the module: (T, K, N, D) with D % num_heads == 0.
    T, K, N, D = 2, 3, 8, 32
    num_heads = 4

    key0 = jax.random.PRNGKey(0)
    kq, kk, kv = jax.random.split(key0, 3)
    query = jax.random.normal(kq, (T, K, N, D), dtype=jnp.float32)
    keyt = jax.random.normal(kk, (T, K, N, D), dtype=jnp.float32)
    value = jax.random.normal(kv, (T, K, N, D), dtype=jnp.float32)

    out = multi_head_attention2(query, keyt, value, num_heads)
    out = jax.block_until_ready(out)

    ref = _reference(query, keyt, value, num_heads)
    assert out.shape == (T, K, N, D)
    # Tolerance covers the precision gap between the MXU's native f32 matmul path
    # (Pallas/Mosaic) and XLA's default-precision f32 dots used by the reference;
    # the kernel itself uses exact softmax (no approximate reciprocal).
    assert jnp.allclose(out, ref, atol=2e-2, rtol=2e-2), float(
        jnp.max(jnp.abs(out - ref))
    )

    print("KERNEL_OK")
</pallas_src>

<mosaic_0001>
module attributes {stable_mosaic.version = 11 : i64} {
  func.func @_mha_kernel(%arg0: i32, %arg1: memref<6x8x32xf32, #tpu.memory_space<vmem>>, %arg2: memref<6x8x32xf32, #tpu.memory_space<vmem>>, %arg3: memref<6x8x32xf32, #tpu.memory_space<vmem>>, %arg4: memref<6x8x32xf32, #tpu.memory_space<vmem>>) attributes {dimension_semantics = [#tpu.dimension_semantics<parallel>], iteration_bounds = array<i64: 1>, scalar_prefetch = 0 : i64, scratch_operands = 0 : i64, tpu.core_type = #tpu.core_type<tc>, window_params = [{transform_indices = @transform_0, window_bounds = array<i64: 6, 8, 32>}, {transform_indices = @transform_1, window_bounds = array<i64: 6, 8, 32>}, {transform_indices = @transform_2, window_bounds = array<i64: 6, 8, 32>}, {transform_indices = @transform_3, window_bounds = array<i64: 6, 8, 32>}]} {
    %c0 = arith.constant 0 : index
    %c0_0 = arith.constant 0 : index
    %c0_1 = arith.constant 0 : index
    %0 = vector.load %arg1[%c0, %c0_0, %c0_1] : memref<6x8x32xf32, #tpu.memory_space<vmem>>, vector<6x8x32xf32>
    %c0_2 = arith.constant 0 : index
    %c0_3 = arith.constant 0 : index
    %c0_4 = arith.constant 0 : index
    %1 = vector.load %arg2[%c0_2, %c0_3, %c0_4] : memref<6x8x32xf32, #tpu.memory_space<vmem>>, vector<6x8x32xf32>
    %c0_5 = arith.constant 0 : index
    %c0_6 = arith.constant 0 : index
    %c0_7 = arith.constant 0 : index
    %2 = vector.load %arg3[%c0_5, %c0_6, %c0_7] : memref<6x8x32xf32, #tpu.memory_space<vmem>>, vector<6x8x32xf32>
    %3 = vector.extract_strided_slice %0 {offsets = [0, 0, 0], sizes = [6, 8, 8], strides = [1, 1, 1]} : vector<6x8x32xf32> to vector<6x8x8xf32>
    %4 = vector.extract_strided_slice %1 {offsets = [0, 0, 0], sizes = [6, 8, 8], strides = [1, 1, 1]} : vector<6x8x32xf32> to vector<6x8x8xf32>
    %5 = vector.extract_strided_slice %2 {offsets = [0, 0, 0], sizes = [6, 8, 8], strides = [1, 1, 1]} : vector<6x8x32xf32> to vector<6x8x8xf32>
    "tpu.trace_start"() <{level = 10 : i32, message = "bnd,bmd->bnm"}> : () -> ()
    %cst = arith.constant dense<0.000000e+00> : vector<6x8x8xf32>
    %6 = tpu.matmul %3, %4, %cst {dimension_numbers = #tpu.dot_dimension_numbers<[2], [2], [1], [1], [0, 0, 0, 1, 1, 1], [0], [0]>} : vector<6x8x8xf32>, vector<6x8x8xf32>, vector<6x8x8xf32> -> vector<6x8x8xf32>
    "tpu.trace_stop"() : () -> ()
    %cst_8 = arith.constant 0.353553385 : f32
    %7 = vector.broadcast %cst_8 : f32 to vector<6x8x8xf32>
    %8 = arith.mulf %6, %7 : vector<6x8x8xf32>
    %cst_9 = arith.constant dense<0xFF800000> : vector<6x8xf32>
    %9 = vector.multi_reduction <maximumf>, %8, %cst_9 [2] : vector<6x8x8xf32> to vector<6x8xf32>
    %10 = vector.shape_cast %9 : vector<6x8xf32> to vector<6x8x1xf32>
    %11 = vector.broadcast %10 : vector<6x8x1xf32> to vector<6x8x8xf32>
    %12 = arith.subf %8, %11 : vector<6x8x8xf32>
    %13 = math.exp %12 : vector<6x8x8xf32>
    %cst_10 = arith.constant dense<0.000000e+00> : vector<6x8xf32>
    %14 = vector.multi_reduction <add>, %13, %cst_10 [2] : vector<6x8x8xf32> to vector<6x8xf32>
    %15 = vector.shape_cast %14 : vector<6x8xf32> to vector<6x8x1xf32>
    %16 = vector.broadcast %15 : vector<6x8x1xf32> to vector<6x8x8xf32>
    %17 = arith.divf %13, %16 : vector<6x8x8xf32>
    "tpu.trace_start"() <{level = 10 : i32, message = "bnm,bmd->bnd"}> : () -> ()
    %cst_11 = arith.constant dense<0.000000e+00> : vector<6x8x8xf32>
    %18 = tpu.matmul %17, %5, %cst_11 {dimension_numbers = #tpu.dot_dimension_numbers<[2], [1], [1], [2], [0, 0, 0, 1, 1, 2], [0], [0]>} : vector<6x8x8xf32>, vector<6x8x8xf32>, vector<6x8x8xf32> -> vector<6x8x8xf32>
    "tpu.trace_stop"() : () -> ()
    %19 = vector.extract_strided_slice %0 {offsets = [0, 0, 8], sizes = [6, 8, 8], strides = [1, 1, 1]} : vector<6x8x32xf32> to vector<6x8x8xf32>
    %20 = vector.extract_strided_slice %1 {offsets = [0, 0, 8], sizes = [6, 8, 8], strides = [1, 1, 1]} : vector<6x8x32xf32> to vector<6x8x8xf32>
    %21 = vector.extract_strided_slice %2 {offsets = [0, 0, 8], sizes = [6, 8, 8], strides = [1, 1, 1]} : vector<6x8x32xf32> to vector<6x8x8xf32>
    "tpu.trace_start"() <{level = 10 : i32, message = "bnd,bmd->bnm"}> : () -> ()
    %cst_12 = arith.constant dense<0.000000e+00> : vector<6x8x8xf32>
    %22 = tpu.matmul %19, %20, %cst_12 {dimension_numbers = #tpu.dot_dimension_numbers<[2], [2], [1], [1], [0, 0, 0, 1, 1, 1], [0], [0]>} : vector<6x8x8xf32>, vector<6x8x8xf32>, vector<6x8x8xf32> -> vector<6x8x8xf32>
    "tpu.trace_stop"() : () -> ()
    %cst_13 = arith.constant 0.353553385 : f32
    %23 = vector.broadcast %cst_13 : f32 to vector<6x8x8xf32>
    %24 = arith.mulf %22, %23 : vector<6x8x8xf32>
    %cst_14 = arith.constant dense<0xFF800000> : vector<6x8xf32>
    %25 = vector.multi_reduction <maximumf>, %24, %cst_14 [2] : vector<6x8x8xf32> to vector<6x8xf32>
    %26 = vector.shape_cast %25 : vector<6x8xf32> to vector<6x8x1xf32>
    %27 = vector.broadcast %26 : vector<6x8x1xf32> to vector<6x8x8xf32>
    %28 = arith.subf %24, %27 : vector<6x8x8xf32>
    %29 = math.exp %28 : vector<6x8x8xf32>
    %cst_15 = arith.constant dense<0.000000e+00> : vector<6x8xf32>
    %30 = vector.multi_reduction <add>, %29, %cst_15 [2] : vector<6x8x8xf32> to vector<6x8xf32>
    %31 = vector.shape_cast %30 : vector<6x8xf32> to vector<6x8x1xf32>
    %32 = vector.broadcast %31 : vector<6x8x1xf32> to vector<6x8x8xf32>
    %33 = arith.divf %29, %32 : vector<6x8x8xf32>
    "tpu.trace_start"() <{level = 10 : i32, message = "bnm,bmd->bnd"}> : () -> ()
    %cst_16 = arith.constant dense<0.000000e+00> : vector<6x8x8xf32>
    %34 = tpu.matmul %33, %21, %cst_16 {dimension_numbers = #tpu.dot_dimension_numbers<[2], [1], [1], [2], [0, 0, 0, 1, 1, 2], [0], [0]>} : vector<6x8x8xf32>, vector<6x8x8xf32>, vector<6x8x8xf32> -> vector<6x8x8xf32>
    "tpu.trace_stop"() : () -> ()
    %35 = vector.extract_strided_slice %0 {offsets = [0, 0, 16], sizes = [6, 8, 8], strides = [1, 1, 1]} : vector<6x8x32xf32> to vector<6x8x8xf32>
    %36 = vector.extract_strided_slice %1 {offsets = [0, 0, 16], sizes = [6, 8, 8], strides = [1, 1, 1]} : vector<6x8x32xf32> to vector<6x8x8xf32>
    %37 = vector.extract_strided_slice %2 {offsets = [0, 0, 16], sizes = [6, 8, 8], strides = [1, 1, 1]} : vector<6x8x32xf32> to vector<6x8x8xf32>
    "tpu.trace_start"() <{level = 10 : i32, message = "bnd,bmd->bnm"}> : () -> ()
    %cst_17 = arith.constant dense<0.000000e+00> : vector<6x8x8xf32>
    %38 = tpu.matmul %35, %36, %cst_17 {dimension_numbers = #tpu.dot_dimension_numbers<[2], [2], [1], [1], [0, 0, 0, 1, 1, 1], [0], [0]>} : vector<6x8x8xf32>, vector<6x8x8xf32>, vector<6x8x8xf32> -> vector<6x8x8xf32>
    "tpu.trace_stop"() : () -> ()
    %cst_18 = arith.constant 0.353553385 : f32
    %39 = vector.broadcast %cst_18 : f32 to vector<6x8x8xf32>
    %40 = arith.mulf %38, %39 : vector<6x8x8xf32>
    %cst_19 = arith.constant dense<0xFF800000> : vector<6x8xf32>
    %41 = vector.multi_reduction <maximumf>, %40, %cst_19 [2] : vector<6x8x8xf32> to vector<6x8xf32>
    %42 = vector.shape_cast %41 : vector<6x8xf32> to vector<6x8x1xf32>
    %43 = vector.broadcast %42 : vector<6x8x1xf32> to vector<6x8x8xf32>
    %44 = arith.subf %40, %43 : vector<6x8x8xf32>
    %45 = math.exp %44 : vector<6x8x8xf32>
    %cst_20 = arith.constant dense<0.000000e+00> : vector<6x8xf32>
    %46 = vector.multi_reduction <add>, %45, %cst_20 [2] : vector<6x8x8xf32> to vector<6x8xf32>
    %47 = vector.shape_cast %46 : vector<6x8xf32> to vector<6x8x1xf32>
    %48 = vector.broadcast %47 : vector<6x8x1xf32> to vector<6x8x8xf32>
    %49 = arith.divf %45, %48 : vector<6x8x8xf32>
    "tpu.trace_start"() <{level = 10 : i32, message = "bnm,bmd->bnd"}> : () -> ()
    %cst_21 = arith.constant dense<0.000000e+00> : vector<6x8x8xf32>
    %50 = tpu.matmul %49, %37, %cst_21 {dimension_numbers = #tpu.dot_dimension_numbers<[2], [1], [1], [2], [0, 0, 0, 1, 1, 2], [0], [0]>} : vector<6x8x8xf32>, vector<6x8x8xf32>, vector<6x8x8xf32> -> vector<6x8x8xf32>
    "tpu.trace_stop"() : () -> ()
    %51 = vector.extract_strided_slice %0 {offsets = [0, 0, 24], sizes = [6, 8, 8], strides = [1, 1, 1]} : vector<6x8x32xf32> to vector<6x8x8xf32>
    %52 = vector.extract_strided_slice %1 {offsets = [0, 0, 24], sizes = [6, 8, 8], strides = [1, 1, 1]} : vector<6x8x32xf32> to vector<6x8x8xf32>
    %53 = vector.extract_strided_slice %2 {offsets = [0, 0, 24], sizes = [6, 8, 8], strides = [1, 1, 1]} : vector<6x8x32xf32> to vector<6x8x8xf32>
    "tpu.trace_start"() <{level = 10 : i32, message = "bnd,bmd->bnm"}> : () -> ()
    %cst_22 = arith.constant dense<0.000000e+00> : vector<6x8x8xf32>
    %54 = tpu.matmul %51, %52, %cst_22 {dimension_numbers = #tpu.dot_dimension_numbers<[2], [2], [1], [1], [0, 0, 0, 1, 1, 1], [0], [0]>} : vector<6x8x8xf32>, vector<6x8x8xf32>, vector<6x8x8xf32> -> vector<6x8x8xf32>
    "tpu.trace_stop"() : () -> ()
    %cst_23 = arith.constant 0.353553385 : f32
    %55 = vector.broadcast %cst_23 : f32 to vector<6x8x8xf32>
    %56 = arith.mulf %54, %55 : vector<6x8x8xf32>
    %cst_24 = arith.constant dense<0xFF800000> : vector<6x8xf32>
    %57 = vector.multi_reduction <maximumf>, %56, %cst_24 [2] : vector<6x8x8xf32> to vector<6x8xf32>
    %58 = vector.shape_cast %57 : vector<6x8xf32> to vector<6x8x1xf32>
    %59 = vector.broadcast %58 : vector<6x8x1xf32> to vector<6x8x8xf32>
    %60 = arith.subf %56, %59 : vector<6x8x8xf32>
    %61 = math.exp %60 : vector<6x8x8xf32>
    %cst_25 = arith.constant dense<0.000000e+00> : vector<6x8xf32>
    %62 = vector.multi_reduction <add>, %61, %cst_25 [2] : vector<6x8x8xf32> to vector<6x8xf32>
    %63 = vector.shape_cast %62 : vector<6x8xf32> to vector<6x8x1xf32>
    %64 = vector.broadcast %63 : vector<6x8x1xf32> to vector<6x8x8xf32>
    %65 = arith.divf %61, %64 : vector<6x8x8xf32>
    "tpu.trace_start"() <{level = 10 : i32, message = "bnm,bmd->bnd"}> : () -> ()
    %cst_26 = arith.constant dense<0.000000e+00> : vector<6x8x8xf32>
    %66 = tpu.matmul %65, %53, %cst_26 {dimension_numbers = #tpu.dot_dimension_numbers<[2], [1], [1], [2], [0, 0, 0, 1, 1, 2], [0], [0]>} : vector<6x8x8xf32>, vector<6x8x8xf32>, vector<6x8x8xf32> -> vector<6x8x8xf32>
    "tpu.trace_stop"() : () -> ()
    %67 = tpu.concatenate %18, %34, %50, %66 in 2 : vector<6x8x8xf32>, vector<6x8x8xf32>, vector<6x8x8xf32>, vector<6x8x8xf32> -> vector<6x8x32xf32>
    %c0_27 = arith.constant 0 : index
    %c0_28 = arith.constant 0 : index
    %c0_29 = arith.constant 0 : index
    %68 = vector.load %arg4[%c0_27, %c0_28, %c0_29] : memref<6x8x32xf32, #tpu.memory_space<vmem>>, vector<6x8x32xf32>
    tpu.vector_store %arg4[%c0_27, %c0_28, %c0_29], %67 {strides = array<i32>} : memref<6x8x32xf32, #tpu.memory_space<vmem>>, vector<6x8x32xf32>,
    return
  }
  func.func @transform_0(%arg0: i32) -> (i32, i32, i32) {
    %c0_i32 = arith.constant 0 : i32
    %c0_i32_0 = arith.constant 0 : i32
    %c0_i32_1 = arith.constant 0 : i32
    return %arg0, %c0_i32, %c0_i32_0 : i32, i32, i32
  }
  func.func @transform_1(%arg0: i32) -> (i32, i32, i32) {
    %c0_i32 = arith.constant 0 : i32
    %c0_i32_0 = arith.constant 0 : i32
    %c0_i32_1 = arith.constant 0 : i32
    return %arg0, %c0_i32, %c0_i32_0 : i32, i32, i32
  }
  func.func @transform_2(%arg0: i32) -> (i32, i32, i32) {
    %c0_i32 = arith.constant 0 : i32
    %c0_i32_0 = arith.constant 0 : i32
    %c0_i32_1 = arith.constant 0 : i32
    return %arg0, %c0_i32, %c0_i32_0 : i32, i32, i32
  }
  func.func @transform_3(%arg0: i32) -> (i32, i32, i32) {
    %c0_i32 = arith.constant 0 : i32
    %c0_i32_0 = arith.constant 0 : i32
    %c0_i32_1 = arith.constant 0 : i32
    return %arg0, %c0_i32, %c0_i32_0 : i32, i32, i32
  }
}

</mosaic_0001>

<bundles_post_ra>
// kernel: tpu_custom_call.1
= control target key start
LH: loop header
LB: loop body
LE: loop exit
PB: predicated region body
PF: predicated region fallthrough
CT: control target
= control target key end

     0   :  { %8 = vsyncpa [#allocation3], 0  ;;  %s5362_s0 = inlined_call_operand.hbm [shape: f32[6,8,32], index: 0, kind: input, shape index: {}]   ;;  %s5363_s1 = inlined_call_operand.hbm [shape: f32[6,8,32], index: 1, kind: input, shape index: {}]   ;;  %s5364_s2 = inlined_call_operand.hbm [shape: f32[6,8,32], index: 2, kind: input, shape index: {}]   ;;  %s5365_s3 = inlined_call_operand.hbm [shape: f32[6,8,32], index: 3, kind: output, shape index: {}]  }
   0x1   :  { %9 = vsyncpa [#allocation6], 0 }
   0x2   :  { %10 = vsyncpa [#allocation4], 0  ;;  %s4759_s12 = smov [#allocation5]   ;;  %s4760_s14 = smov [#allocation2]  }
   0x3   :  { %s28_s13 = sshll.u32 %s4759_s12, 4  ;;  %s16_s15 = sshll.u32 %s4760_s14, 4  ;;  %s29_s13 = int_to_ptr.vmem [resolvable:$true] %s28_s13  ;;  %s17_s15 = int_to_ptr.vmem [resolvable:$true] %s16_s15 }
   0x4   :  { %s4681_s16 = scalar_lea.vmem %s29_s13, 768  ;;  %p4686_p1 = scmp.lt.s32.totalorder %s29_s13, %s29_s13 }
   0x5   :  { %p4682_p0 = scmp.ne.s32.totalorder %s29_s13, %s4681_s16  ;;  %p4687_p2 = scmp.lt.s32.totalorder %s4681_s16, %s4681_s16 }
   0x7   :  { %p4688_p3 = por %p4687_p2, %p4686_p1 }
   0x9   :  { %p4689_p4 = pnand %p4688_p3, %p4682_p0 }
   0xb   :  { %4692 = shalt.err (!%p4689_p4)
}
   0xc   :  { %s4761_s17 = smov 128   ;;  %s4762_s18 = smov 8  }
   0xd   :  { %34 = dma.hbm_to_vmem [thread:$0]  %s5363_s1, 768, %s29_s13, [#allocation6], %s4761_s17, %s4761_s17, %s4762_s18  }
   0xe   :  { %s4701_s21 = scalar_lea.vmem %s17_s15, 768  ;;  %p4706_p6 = scmp.lt.s32.totalorder %s17_s15, %s17_s15 }
   0xf   :  { %p4702_p5 = scmp.ne.s32.totalorder %s17_s15, %s4701_s21  ;;  %p4707_p7 = scmp.lt.s32.totalorder %s4701_s21, %s4701_s21 }
  0x11   :  { %p4708_p8 = por %p4707_p7, %p4706_p6 }
  0x13   :  { %p4709_p9 = pnand %p4708_p8, %p4702_p5 }
  0x15   :  { %4712 = shalt.err (!%p4709_p9)
}
  0x16   :  { %22 = dma.hbm_to_vmem [thread:$0]  %s5362_s0, 768, %s17_s15, [#allocation3], %s4761_s17, %s4761_s17, %s4762_s18  }
  0x17   :  { %s4763_s24 = smov [#allocation7]  }
  0x18   :  { %s40_s25 = sshll.u32 %s4763_s24, 4  ;;  %s41_s25 = int_to_ptr.vmem [resolvable:$true] %s40_s25 }
  0x19   :  { %s4721_s26 = scalar_lea.vmem %s41_s25, 768  ;;  %p4726_p11 = scmp.lt.s32.totalorder %s41_s25, %s41_s25 }
  0x1a   :  { %p4722_p10 = scmp.ne.s32.totalorder %s41_s25, %s4721_s26  ;;  %p4727_p12 = scmp.lt.s32.totalorder %s4721_s26, %s4721_s26 }
  0x1c   :  { %p4728_p13 = por %p4727_p12, %p4726_p11 }
  0x1e   :  { %p4729_p0 = pnand %p4728_p13, %p4722_p10 }
  0x20   :  { %4732 = shalt.err (!%p4729_p0)
}
  0x21   :  { %46 = dma.hbm_to_vmem [thread:$0]  %s5364_s2, 768, %s41_s25, [#allocation6], %s4761_s17, %s4761_s17, %s4762_s18  }
  0x22   :  { %4753 = dma.done.wait [#allocation3], 768  }
  0x23   :  { %4754 = vsyncadd [#allocation3], 4294966528 }
  0x24   :  { %4755 = dma.done.wait [#allocation6], 1536  }
  0x25   :  { %4756 = vsyncadd [#allocation6], 4294965760  ;;  %v4764_v0 = vmov 0.0   ;;  %vm4765_vm0 = vmmov 0   ;;  %vm74_vm1 = vcmask 64512   ;;  %v4816_v1 = vld [vmem:[#allocation5] sm:$0xff] }
  0x26   :  { %4320 = vmatprep.subr.mxu0 %v4764_v0  ;;  %4322 = vmatprep.mubr.msk.f32.mxu0 %vm4765_vm0, %v4764_v0  ;;  %v4818_v2 = vld [vmem:[#allocation5 + $0x8] sm:$0xff]  ;;  %v4822_v3 = vld [vmem:[#allocation2] sm:$0xff]  ;;  %v4826_v4 = vld [vmem:[#allocation2 + $0x8] sm:$0xff]  ;;  %s4766_s0 = smov 120   ;;  %s4767_s2 = smov 112   ;;  %vm4113_vm2 = vcmask 130048  }
  0x27   :  { %4325 = vmatprep.subr.mxu1 %v4764_v0  ;;  %4327 = vmatprep.mubr.msk.f32.mxu1 %vm4765_vm0, %v4764_v0  ;;  %v4829_v5 = vld [vmem:[#allocation5 + $0x10] sm:$0xff]  ;;  %v4832_v6 = vld [vmem:[#allocation5 + $0x18] sm:$0xff]  ;;  %v4842_v7 = vld [vmem:[#allocation2 + $0x10] sm:$0xff]  ;;  %s4768_s28 = smov 104   ;;  %s4769_s29 = smov 16   ;;  %vm4120_vm3 = vcmask 195584  }
  0x28   :  { %4321 = vmatpush3.xpose.msk.msra.mxu0 %vm74_vm1, %v4816_v1  ;;  %4326 = vmatpush3.xpose.msk.msra.mxu1 %vm74_vm1, %v4818_v2  ;;  %v4847_v8 = vld [vmem:[#allocation5 + $0x20] sm:$0xff]  ;;  %v4849_v9 = vld [vmem:[#allocation2 + $0x18] sm:$0xff]  ;;  %v4862_v11 = vld [vmem:[#allocation2 + $0x20] sm:$0xff]  ;;  %s4770_s30 = smov 24   ;;  %vm4127_vm4 = vcmask 261120   ;;  %s4771_s4 = smov [#allocation8]  }
  0x29   :  { %4330 = vmatprep.subr.mxu0 %v4764_v0  ;;  %4335 = vmatprep.subr.mxu1 %v4764_v0  ;;  %v4854_v10 = vld [vmem:[#allocation5 + $0x28] sm:$0xff]  ;;  %v4868_v12 = vld [vmem:[#allocation2 + $0x28] sm:$0xff]  ;;  %v4904_v62 = vld [vmem:[#allocation7] sm:$0xff]  ;;  %s4139_s5 = sshll.u32 %s4771_s4, 4  ;;  %s4140_s5 = int_to_ptr.vmem [resolvable:$true] %s4139_s5 }
  0x2a   :  { %v4910_v63 = vld [vmem:[#allocation7 + $0x8] sm:$0xff]  ;;  %s4733_s6 = scalar_lea.vmem %s4140_s5, 768  ;;  %p4738_p2 = scmp.lt.s32.totalorder %s4140_s5, %s4140_s5 }
  0x2b   :  { %4323 = vmatmul.mubr.msk.f32.vlgmr.msra.gmra.mxu0 %vm74_vm1, %v4822_v3  ;;  %4328 = vmatmul.mubr.msk.f32.vlgmr.msra.gmra.mxu1 %vm74_vm1, %v4826_v4  ;;  %p4734_p1 = scmp.ne.s32.totalorder %s4140_s5, %s4733_s6  ;;  %p4739_p3 = scmp.lt.s32.totalorder %s4733_s6, %s4733_s6 }
  0x2c   :  { %4331 = vmatpush3.xpose.msk.msra.mxu0 %vm74_vm1, %v4829_v5  ;;  %4332 = vmatprep.mubr.msk.f32.mxu0 %vm4765_vm0, %v4764_v0 }
  0x2d   :  { %4336 = vmatpush3.xpose.msk.msra.mxu1 %vm74_vm1, %v4832_v6  ;;  %4340 = vmatprep.subr.mxu0 %v4764_v0  ;;  %p4740_p4 = por %p4739_p3, %p4738_p2 }
  0x2e   :  { %4337 = vmatprep.mubr.msk.f32.mxu1 %vm4765_vm0, %v4764_v0  ;;  %4345 = vmatprep.subr.mxu1 %v4764_v0 }
  0x2f   :  { %4333 = vmatmul.mubr.msk.f32.vlgmr.msra.gmra.mxu0 %vm74_vm1, %v4842_v7  ;;  %p4741_p5 = pnand %p4740_p4, %p4734_p1 }
  0x30   :  { %4341 = vmatpush3.xpose.msk.msra.mxu0 %vm74_vm1, %v4847_v8  ;;  %4338 = vmatmul.mubr.msk.f32.vlgmr.msra.gmra.mxu1 %vm74_vm1, %v4849_v9 }
  0x31   :  { %4342 = vmatprep.mubr.msk.f32.mxu0 %vm4765_vm0, %v4764_v0  ;;  %4346 = vmatpush3.xpose.msk.msra.mxu1 %vm74_vm1, %v4854_v10 }
  0x32   :  { %4347 = vmatprep.mubr.msk.f32.mxu1 %vm4765_vm0, %v4764_v0  ;;  %4350 = vmatprep.subr.mxu0 %v4764_v0 }
  0x33   :  { %4343 = vmatmul.mubr.msk.f32.vlgmr.msra.gmra.mxu0 %vm74_vm1, %v4862_v11  ;;  %4355 = vmatprep.subr.mxu1 %v4764_v0 }
  0x34   :  { %4348 = vmatmul.mubr.msk.f32.vlgmr.msra.gmra.mxu1 %vm74_vm1, %v4868_v12  ;;  %4352 = vmatprep.mubr.msk.f32.mxu0 %vm4765_vm0, %v4764_v0 }
  0x35   :  { %4357 = vmatprep.mubr.msk.f32.mxu1 %vm4765_vm0, %v4764_v0  ;;  %4351 = vmatpush3.msra.mxu0 %v4904_v62 }
  0x36   :  { %4360 = vmatprep.subr.mxu0 %v4764_v0  ;;  %4356 = vmatpush3.msra.mxu1 %v4910_v63 }
  0x37   :  { %4365 = vmatprep.subr.mxu1 %v4764_v0 }
  0xeb   :  { %v147_v13 = vpop.f32.mrf.mxu0  ;;  %v223_v14 = vpop.f32.mrf.mxu1 }
  0xec   :  { %v531_v15 = vmul.f32 0.35355338, %v147_v13  ;;  %v532_v16 = vmul.f32 0.35355338, %v223_v14 }
  0xed   :  { %v4324_v17 = vpop.f32.mrf.mxu0  ;;  %v4329_v18 = vpop.f32.mrf.mxu1 }
  0xee   :  { %v537_v19 = vsel %vm74_vm1, %v531_v15, -inf  ;;  %v540_v23 = vsel %vm74_vm1, %v532_v16, -inf }
  0xef   :  { %538 = vmax.xlane.f32.xlu0 %v537_v19  ;;  %v299_v20 = vpop.f32.mrf.mxu0 }
  0xf0   :  { %v533_v21 = vmul.f32 0.35355338, %v299_v20  ;;  %v375_v22 = vpop.f32.mrf.mxu1 }
  0xf1   :  { %v4334_v24 = vpop.f32.mrf.mxu0  ;;  %v534_v25 = vmul.f32 0.35355338, %v375_v22 }
  0xf2   :  { %v543_v26 = vsel %vm74_vm1, %v533_v21, -inf  ;;  %v4339_v27 = vpop.f32.mrf.mxu1 }
  0xf3   :  { %541 = vmax.xlane.f32.xlu0 %v540_v23  ;;  %544 = vmax.xlane.f32.xlu1 %v543_v26  ;;  %v451_v28 = vpop.f32.mrf.mxu0  ;;  %v546_v30 = vsel %vm74_vm1, %v534_v25, -inf }
  0xf4   :  { %v535_v29 = vmul.f32 0.35355338, %v451_v28  ;;  %v527_v31 = vpop.f32.mrf.mxu1 }
  0xf5   :  { %v4344_v32 = vpop.f32.mrf.mxu0  ;;  %v536_v35 = vmul.f32 0.35355338, %v527_v31 }
  0xf6   :  { %v549_v33 = vsel %vm74_vm1, %v535_v29, -inf  ;;  %v4349_v34 = vpop.f32.mrf.mxu1 }
  0xf7   :  { %547 = vmax.xlane.f32.xlu1 %v546_v30  ;;  %550 = vmax.xlane.f32.xlu0 %v549_v33  ;;  %v552_v36 = vsel %vm74_vm1, %v536_v35, -inf  ;;  %v4943_v33 = vld [vmem:[#allocation7 + $0x18] sm:$0xff] }
 0x108   :  { %1121 = vrot.lane.b32.xlu1 %v4818_v2, %s4766_s0 }
 0x10c   :  { %1041 = vrot.lane.b32.xlu1 %v4822_v3, %s4766_s0 }
 0x10d   :  { %1043 = vrot.lane.b32.xlu0 %v4816_v1, %s4766_s0 }
 0x130   :  { %553 = vmax.xlane.f32.xlu1 %v552_v36  ;;  %v4945_v36 = vld [vmem:[#allocation7 + $0x20] sm:$0xff] }
 0x141   :  { %1119 = vrot.lane.b32.xlu1 %v4826_v4, %s4766_s0 }
 0x178   :  { %v539_v37 = vpop.xlane.xlu0 %538 }
 0x179   :  { %v555_v38 = vsub.f32 %v531_v15, %v539_v37 }
 0x17b   :  { %v561_v39 = vmul.f32 1.442695, %v555_v38 }
 0x17c   :  { %v542_v40 = vpop.xlane.xlu0 %541  ;;  %v545_v41 = vpop.xlane.xlu1 %544 }
 0x17d   :  { %4573 = vpow2.f32 %v561_v39  ;;  %v556_v42 = vsub.f32 %v532_v16, %v542_v40  ;;  %v557_v43 = vsub.f32 %v533_v21, %v545_v41  ;;  %v4953_v40 = vld [vmem:[#allocation7 + $0x28] sm:$0xff] }
 0x17f   :  { %v563_v44 = vmul.f32 1.442695, %v556_v42  ;;  %v565_v45 = vmul.f32 1.442695, %v557_v43 }
 0x180   :  { %v548_v46 = vpop.xlane.xlu1 %547  ;;  %v551_v47 = vpop.xlane.xlu0 %550 }
 0x181   :  { %4575 = vpow2.f32 %v563_v44  ;;  %v558_v48 = vsub.f32 %v534_v25, %v548_v46  ;;  %v559_v49 = vsub.f32 %v535_v29, %v551_v47  ;;  %v4936_v29 = vld [vmem:[#allocation7 + $0x10] sm:$0xff] }
 0x182   :  { %4577 = vpow2.f32 %v565_v45 }
 0x183   :  { %v567_v50 = vmul.f32 1.442695, %v558_v48  ;;  %v569_v51 = vmul.f32 1.442695, %v559_v49 }
 0x184   :  { %v4918_v13 = vpop.permute.xlu1 %1121  ;;  %v1044_v20 = vpop.permute.xlu0 %1043 }
 0x185   :  { %4579 = vpow2.f32 %v567_v50 }
 0x186   :  { %4581 = vpow2.f32 %v569_v51 }
 0x188   :  { %v1042_v14 = vpop.permute.xlu1 %1041 }
 0x18a   :  { %v4574_v52 = vpop.eup %4573 }
 0x18b   :  { %v573_v53 = vsel %vm74_vm1, %v4574_v52, 0.0 }
 0x18c   :  { %574 = vadd.xlane.f32.xlu0 %v573_v53 }
 0x18e   :  { %v4576_v54 = vpop.eup %4575 }
 0x18f   :  { %v4578_v55 = vpop.eup %4577  ;;  %v576_v56 = vsel %vm74_vm1, %v4576_v54, 0.0 }
 0x190   :  { %577 = vadd.xlane.f32.xlu1 %v576_v56  ;;  %v579_v57 = vsel %vm74_vm1, %v4578_v55, 0.0 }
 0x191   :  { %580 = vadd.xlane.f32.xlu0 %v579_v57 }
 0x192   :  { %v4580_v58 = vpop.eup %4579 }
 0x193   :  { %v4899_v59 = vpop.eup %4581  ;;  %v582_v60 = vsel %vm74_vm1, %v4580_v58, 0.0 }
 0x194   :  { %583 = vadd.xlane.f32.xlu1 %v582_v60  ;;  %v585_v61 = vsel %vm74_vm1, %v4899_v59, 0.0 }
 0x195   :  { %586 = vadd.xlane.f32.xlu0 %v585_v61 }
 0x1a5   :  { %1277 = vrot.lane.b32.xlu1 %v4832_v6, %s4766_s0 }
 0x1a9   :  { %1275 = vrot.lane.b32.xlu1 %v4849_v9, %s4766_s0 }
 0x1ab   :  { %1199 = vrot.lane.b32.xlu0 %v4829_v5, %s4766_s0 }
 0x1af   :  { %1197 = vrot.lane.b32.xlu0 %v4842_v7, %s4766_s0 }
 0x1b3   :  { %1355 = vrot.lane.b32.xlu0 %v4847_v8, %s4766_s0 }
 0x1b7   :  { %1353 = vrot.lane.b32.xlu0 %v4862_v11, %s4766_s0 }
 0x1b9   :  { %v554_v15 = vpop.xlane.xlu1 %553 }
 0x1ba   :  { %v560_v16 = vsub.f32 %v536_v35, %v554_v15 }
 0x1bc   :  { %v571_v17 = vmul.f32 1.442695, %v560_v16 }
 0x1bd   :  { %v4934_v21 = vpop.permute.xlu1 %1119 }
 0x1be   :  { %4583 = vpow2.f32 %v571_v17 }
 0x1cb   :  { %v4926_v18 = vpop.eup %4583 }
 0x1cc   :  { %v588_v19 = vsel %vm74_vm1, %v4926_v18, 0.0 }
 0x1cd   :  { %589 = vadd.xlane.f32.xlu1 %v588_v19 }
 0x1de   :  { %1433 = vrot.lane.b32.xlu1 %v4854_v10, %s4766_s0 }
 0x1e2   :  { %1431 = vrot.lane.b32.xlu1 %v4868_v12, %s4766_s0 }
 0x215   :  { %v575_v22 = vpop.xlane.xlu0 %574 }
 0x216   :  { %4585 = vrcp.f32 %v575_v22 }
 0x219   :  { %v578_v23 = vpop.xlane.xlu1 %577 }
 0x21a   :  { %4587 = vrcp.f32 %v578_v23  ;;  %v581_v24 = vpop.xlane.xlu0 %580 }
 0x21b   :  { %4589 = vrcp.f32 %v581_v24 }
 0x21d   :  { %v584_v25 = vpop.xlane.xlu1 %583 }
 0x21e   :  { %4591 = vrcp.f32 %v584_v25  ;;  %v587_v26 = vpop.xlane.xlu0 %586 }
 0x21f   :  { %4593 = vrcp.f32 %v587_v26 }
 0x221   :  { %v1278_v45 = vpop.permute.xlu1 %1277 }
 0x222   :  { %v1200_v34 = vpop.permute.xlu0 %1199 }
 0x223   :  { %v4586_v27 = vpop.eup %4585 }
 0x224   :  { %v592_v28 = vmul.f32 %v4586_v27, %v4574_v52 }
 0x225   :  { %v1276_v46 = vpop.permute.xlu1 %1275 }
 0x226   :  { %4353 = vmatmul.mubr.msk.f32.vlgmr.msra.gmra.mxu0 %vm74_vm1, %v592_v28  ;;  %v1198_v42 = vpop.permute.xlu0 %1197 }
 0x227   :  { %v4588_v30 = vpop.eup %4587  ;;  %4361 = vmatpush3.msra.mxu0 %v4936_v29  ;;  %4362 = vmatprep.mubr.msk.f32.mxu0 %vm4765_vm0, %v4764_v0 }
 0x228   :  { %v4590_v31 = vpop.eup %4589  ;;  %v594_v32 = vmul.f32 %v4588_v30, %v4576_v54  ;;  %4370 = vmatprep.subr.mxu0 %v4764_v0 }
 0x229   :  { %v596_v35 = vmul.f32 %v4590_v31, %v4578_v55 }
 0x22a   :  { %4358 = vmatmul.mubr.msk.f32.vlgmr.msra.gmra.mxu1 %vm74_vm1, %v594_v32  ;;  %v1356_v43 = vpop.permute.xlu0 %1355 }
 0x22b   :  { %v4592_v37 = vpop.eup %4591  ;;  %4363 = vmatmul.mubr.msk.f32.vlgmr.msra.gmra.mxu0 %vm74_vm1, %v596_v35  ;;  %4366 = vmatpush3.msra.mxu1 %v4943_v33 }
 0x22c   :  { %v4594_v38 = vpop.eup %4593  ;;  %4371 = vmatpush3.msra.mxu0 %v4945_v36  ;;  %4367 = vmatprep.mubr.msk.f32.mxu1 %vm4765_vm0, %v4764_v0  ;;  %v598_v39 = vmul.f32 %v4592_v37, %v4580_v58 }
 0x22d   :  { %4372 = vmatprep.mubr.msk.f32.mxu0 %vm4765_vm0, %v4764_v0  ;;  %4380 = vmatprep.subr.mxu0 %v4764_v0  ;;  %v600_v41 = vmul.f32 %v4594_v38, %v4899_v59 }
 0x22e   :  { %4368 = vmatmul.mubr.msk.f32.vlgmr.msra.gmra.mxu1 %vm74_vm1, %v598_v39  ;;  %4375 = vmatprep.subr.mxu1 %v4764_v0  ;;  %v1354_v44 = vpop.permute.xlu0 %1353 }
 0x22f   :  { %4373 = vmatmul.mubr.msk.f32.vlgmr.msra.gmra.mxu0 %vm74_vm1, %v600_v41  ;;  %4376 = vmatpush3.msra.mxu1 %v4953_v40 }
 0x230   :  { %4381 = vmatpush3.xpose.msk.msra.mxu0 %vm74_vm1, %v1044_v20  ;;  %4382 = vmatprep.mubr.msk.f32.mxu0 %vm4765_vm0, %v4764_v0 }
 0x231   :  { %4390 = vmatprep.subr.mxu0 %v4764_v0  ;;  %4377 = vmatprep.mubr.msk.f32.mxu1 %vm4765_vm0, %v4764_v0 }
 0x232   :  { %4385 = vmatprep.subr.mxu1 %v4764_v0 }
 0x233   :  { %4383 = vmatmul.mubr.msk.f32.vlgmr.msra.gmra.mxu0 %vm74_vm1, %v1042_v14 }
 0x234   :  { %4391 = vmatpush3.xpose.msk.msra.mxu0 %vm74_vm1, %v1200_v34  ;;  %4392 = vmatprep.mubr.msk.f32.mxu0 %vm4765_vm0, %v4764_v0 }
 0x235   :  { %4400 = vmatprep.subr.mxu0 %v4764_v0 }
 0x237   :  { %4393 = vmatmul.mubr.msk.f32.vlgmr.msra.gmra.mxu0 %vm74_vm1, %v1198_v42 }
 0x238   :  { %4401 = vmatpush3.xpose.msk.msra.mxu0 %vm74_vm1, %v1356_v43  ;;  %4402 = vmatprep.mubr.msk.f32.mxu0 %vm4765_vm0, %v4764_v0 }
 0x239   :  { %4410 = vmatprep.subr.mxu0 %v4764_v0 }
 0x23b   :  { %4403 = vmatmul.mubr.msk.f32.vlgmr.msra.gmra.mxu0 %vm74_vm1, %v1354_v44 }
 0x23c   :  { %4412 = vmatprep.mubr.msk.f32.mxu0 %vm4765_vm0, %v4764_v0 }
 0x256   :  { %v590_v47 = vpop.xlane.xlu1 %589 }
 0x257   :  { %4595 = vrcp.f32 %v590_v47 }
 0x25a   :  { %v1434_v50 = vpop.permute.xlu1 %1433 }
 0x25e   :  { %v1432_v51 = vpop.permute.xlu1 %1431 }
 0x264   :  { %v4596_v48 = vpop.eup %4595 }
 0x265   :  { %v602_v49 = vmul.f32 %v4596_v48, %v4926_v18 }
 0x267   :  { %4378 = vmatmul.mubr.msk.f32.vlgmr.msra.gmra.mxu1 %vm74_vm1, %v602_v49 }
 0x268   :  { %4386 = vmatpush3.xpose.msk.msra.mxu1 %vm74_vm1, %v4918_v13  ;;  %4387 = vmatprep.mubr.msk.f32.mxu1 %vm4765_vm0, %v4764_v0 }
 0x269   :  { %4395 = vmatprep.subr.mxu1 %v4764_v0 }
 0x26b   :  { %4388 = vmatmul.mubr.msk.f32.vlgmr.msra.gmra.mxu1 %vm74_vm1, %v4934_v21 }
 0x26c   :  { %4396 = vmatpush3.xpose.msk.msra.mxu1 %vm74_vm1, %v1278_v45  ;;  %4397 = vmatprep.mubr.msk.f32.mxu1 %vm4765_vm0, %v4764_v0 }
 0x26d   :  { %4405 = vmatprep.subr.mxu1 %v4764_v0 }
 0x26f   :  { %4398 = vmatmul.mubr.msk.f32.vlgmr.msra.gmra.mxu1 %vm74_vm1, %v1276_v46 }
 0x270   :  { %4406 = vmatpush3.xpose.msk.msra.mxu1 %vm74_vm1, %v1434_v50  ;;  %4407 = vmatprep.mubr.msk.f32.mxu1 %vm4765_vm0, %v4764_v0 }
 0x271   :  { %4415 = vmatprep.subr.mxu1 %v4764_v0 }
 0x273   :  { %4408 = vmatmul.mubr.msk.f32.vlgmr.msra.gmra.mxu1 %vm74_vm1, %v1432_v51 }
 0x274   :  { %4417 = vmatprep.mubr.msk.f32.mxu1 %vm4765_vm0, %v4764_v0 }
 0x2e6   :  { %v5004_v52 = vpop.f32.mrf.mxu0 }
 0x2e8   :  { %v4354_v53 = vpop.f32.mrf.mxu0 }
 0x2ea   :  { %v5006_v54 = vpop.f32.mrf.mxu1 }
 0x2eb   :  { %v5008_v55 = vpop.f32.mrf.mxu0 }
 0x2ec   :  { %v4359_v56 = vpop.f32.mrf.mxu1 }
 0x2ed   :  { %v4364_v57 = vpop.f32.mrf.mxu0 }
 0x2ee   :  { %v5010_v58 = vpop.f32.mrf.mxu1 }
 0x2ef   :  { %v5012_v59 = vpop.f32.mrf.mxu0 }
 0x2f0   :  { %v4369_v60 = vpop.f32.mrf.mxu1 }
 0x2f1   :  { %v4374_v61 = vpop.f32.mrf.mxu0 }
 0x2f3   :  { %v1115_v13 = vpop.f32.mrf.mxu0 }
 0x2f4   :  { %v1509_v14 = vmul.f32 0.35355338, %v1115_v13 }
 0x2f5   :  { %v4384_v15 = vpop.f32.mrf.mxu0 }
 0x2f6   :  { %v1515_v16 = vsel %vm74_vm1, %v1509_v14, -inf }
 0x2f7   :  { %1516 = vmax.xlane.f32.xlu0 %v1515_v16  ;;  %v1271_v17 = vpop.f32.mrf.mxu0 }
 0x2f8   :  { %v1511_v18 = vmul.f32 0.35355338, %v1271_v17 }
 0x2f9   :  { %v4394_v19 = vpop.f32.mrf.mxu0 }
 0x2fa   :  { %v1521_v20 = vsel %vm74_vm1, %v1511_v18, -inf }
 0x2fb   :  { %1522 = vmax.xlane.f32.xlu0 %v1521_v20  ;;  %v1427_v21 = vpop.f32.mrf.mxu0 }
 0x2fc   :  { %v1513_v32 = vmul.f32 0.35355338, %v1427_v21 }
 0x2fd   :  { %v4404_v22 = vpop.f32.mrf.mxu0 }
 0x2fe   :  { %v1527_v38 = vsel %vm74_vm1, %v1513_v32, -inf }
 0x327   :  { %v5016_v23 = vpop.f32.mrf.mxu1 }
 0x329   :  { %v4379_v24 = vpop.f32.mrf.mxu1 }
 0x32b   :  { %v1193_v25 = vpop.f32.mrf.mxu1 }
 0x32c   :  { %v1510_v26 = vmul.f32 0.35355338, %v1193_v25 }
 0x32d   :  { %v4389_v27 = vpop.f32.mrf.mxu1 }
 0x32e   :  { %v1518_v28 = vsel %vm74_vm1, %v1510_v26, -inf }
 0x32f   :  { %1519 = vmax.xlane.f32.xlu1 %v1518_v28  ;;  %v1349_v30 = vpop.f32.mrf.mxu1 }
 0x330   :  { %v1512_v31 = vmul.f32 0.35355338, %v1349_v30 }
 0x331   :  { %v4399_v34 = vpop.f32.mrf.mxu1 }
 0x332   :  { %v1524_v35 = vsel %vm74_vm1, %v1512_v31, -inf }
 0x333   :  { %1525 = vmax.xlane.f32.xlu0 %v1524_v35  ;;  %v1505_v37 = vpop.f32.mrf.mxu1 }
 0x334   :  { %v1514_v41 = vmul.f32 0.35355338, %v1505_v37 }
 0x335   :  { %v4409_v39 = vpop.f32.mrf.mxu1 }
 0x336   :  { %v1530_v42 = vsel %vm74_vm1, %v1514_v41, -inf }
 0x337   :  { %1528 = vmax.xlane.f32.xlu0 %v1527_v38 }
 0x340   :  { %1659 = vrot.lane.b32.xlu1 %v4910_v63, %s4766_s0 }
 0x344   :  { %1736 = vrot.lane.b32.xlu1 %v4936_v29, %s4766_s0 }
 0x348   :  { %1813 = vrot.lane.b32.xlu1 %v4943_v33, %s4766_s0 }
 0x34c   :  { %1967 = vrot.lane.b32.xlu1 %v4953_v40, %s4766_s0 }
 0x34d   :  { %1582 = vrot.lane.b32.xlu0 %v4904_v62, %s4766_s0 }
 0x350   :  { %2123 = vrot.lane.b32.xlu1 %v4818_v2, %s4767_s2 }
 0x351   :  { %1890 = vrot.lane.b32.xlu0 %v4945_v36, %s4766_s0 }
 0x355   :  { %2045 = vrot.lane.b32.xlu0 %v4816_v1, %s4767_s2 }
 0x359   :  { %2043 = vrot.lane.b32.xlu0 %v4822_v3, %s4767_s2 }
 0x374   :  { %1531 = vmax.xlane.f32.xlu1 %v1530_v42 }
 0x380   :  { %v1517_v43 = vpop.xlane.xlu0 %1516 }
 0x381   :  { %v1533_v44 = vsub.f32 %v1509_v14, %v1517_v43 }
 0x383   :  { %v1539_v45 = vmul.f32 1.442695, %v1533_v44 }
 0x384   :  { %v1523_v46 = vpop.xlane.xlu0 %1522 }
 0x385   :  { %4597 = vpow2.f32 %v1539_v45  ;;  %v1535_v47 = vsub.f32 %v1511_v18, %v1523_v46  ;;  %2121 = vrot.lane.b32.xlu1 %v4826_v4, %s4767_s2 }
 0x387   :  { %v1543_v48 = vmul.f32 1.442695, %v1535_v47 }
 0x389   :  { %4599 = vpow2.f32 %v1543_v48 }
 0x392   :  { %v4598_v49 = vpop.eup %4597 }
 0x393   :  { %v1551_v50 = vsel %vm74_vm1, %v4598_v49, 0.0 }
 0x394   :  { %1552 = vadd.xlane.f32.xlu0 %v1551_v50 }
 0x396   :  { %v4600_v51 = vpop.eup %4599 }
 0x397   :  { %v1557_v53 = vsel %vm74_vm1, %v4600_v51, 0.0 }
 0x398   :  { %1558 = vadd.xlane.f32.xlu0 %v1557_v53 }
 0x3b8   :  { %v1520_v56 = vpop.xlane.xlu1 %1519 }
 0x3b9   :  { %v1534_v57 = vsub.f32 %v1510_v26, %v1520_v56 }
 0x3bb   :  { %v1541_v60 = vmul.f32 1.442695, %v1534_v57 }
 0x3bc   :  { %v1660_v61 = vpop.permute.xlu1 %1659  ;;  %v1526_v13 = vpop.xlane.xlu0 %1525 }
 0x3bd   :  { %4601 = vpow2.f32 %v1541_v60  ;;  %v1536_v14 = vsub.f32 %v1512_v31, %v1526_v13  ;;  %4416 = vmatpush3.msra.mxu1 %v1660_v61 }
 0x3be   :  { %4425 = vmatprep.subr.mxu1 %v4764_v0 }
 0x3bf   :  { %v1545_v15 = vmul.f32 1.442695, %v1536_v14 }
 0x3c0   :  { %v1529_v16 = vpop.xlane.xlu0 %1528  ;;  %v1737_v27 = vpop.permute.xlu1 %1736 }
 0x3c1   :  { %4603 = vpow2.f32 %v1545_v15  ;;  %v1537_v17 = vsub.f32 %v1513_v32, %v1529_v16 }
 0x3c3   :  { %v1547_v18 = vmul.f32 1.442695, %v1537_v17 }
 0x3c4   :  { %v1583_v19 = vpop.permute.xlu0 %1582  ;;  %v1814_v28 = vpop.permute.xlu1 %1813 }
 0x3c5   :  { %4605 = vpow2.f32 %v1547_v18  ;;  %4411 = vmatpush3.msra.mxu0 %v1583_v19 }
 0x3c6   :  { %4420 = vmatprep.subr.mxu0 %v4764_v0 }
 0x3c8   :  { %v1968_v30 = vpop.permute.xlu1 %1967  ;;  %v1891_v37 = vpop.permute.xlu0 %1890 }
 0x3ca   :  { %v4602_v20 = vpop.eup %4601 }
 0x3cb   :  { %v1554_v21 = vsel %vm74_vm1, %v4602_v20, 0.0 }
 0x3cc   :  { %1555 = vadd.xlane.f32.xlu1 %v1554_v21  ;;  %v5061_v31 = vpop.permute.xlu1 %2123  ;;  %v2046_v42 = vpop.permute.xlu0 %2045 }
 0x3ce   :  { %v4604_v22 = vpop.eup %4603 }
 0x3cf   :  { %v1560_v24 = vsel %vm74_vm1, %v4604_v22, 0.0 }
 0x3d0   :  { %1561 = vadd.xlane.f32.xlu1 %v1560_v24  ;;  %v2044_v43 = vpop.permute.xlu0 %2043 }
 0x3d2   :  { %v4606_v25 = vpop.eup %4605 }
 0x3d3   :  { %v1563_v26 = vsel %vm74_vm1, %v4606_v25, 0.0 }
 0x3d4   :  { %1564 = vadd.xlane.f32.xlu0 %v1563_v26 }
 0x3e1   :  { %2279 = vrot.lane.b32.xlu1 %v4832_v6, %s4767_s2 }
 0x3e5   :  { %2277 = vrot.lane.b32.xlu1 %v4849_v9, %s4767_s2 }
 0x3ea   :  { %2201 = vrot.lane.b32.xlu0 %v4829_v5, %s4767_s2 }
 0x3ee   :  { %2199 = vrot.lane.b32.xlu0 %v4842_v7, %s4767_s2 }
 0x3f2   :  { %2357 = vrot.lane.b32.xlu0 %v4847_v8, %s4767_s2 }
 0x3f6   :  { %2355 = vrot.lane.b32.xlu0 %v4862_v11, %s4767_s2 }
 0x3fd   :  { %v1532_v32 = vpop.xlane.xlu1 %1531 }
 0x3fe   :  { %v1538_v34 = vsub.f32 %v1514_v41, %v1532_v32 }
 0x400   :  { %v1549_v35 = vmul.f32 1.442695, %v1538_v34 }
 0x401   :  { %v2122_v50 = vpop.permute.xlu1 %2121 }
 0x402   :  { %4607 = vpow2.f32 %v1549_v35 }
 0x40f   :  { %v5063_v38 = vpop.eup %4607 }
 0x410   :  { %v1566_v39 = vsel %vm74_vm1, %v5063_v38, 0.0 }
 0x411   :  { %1567 = vadd.xlane.f32.xlu1 %v1566_v39 }
 0x41d   :  { %v1553_v44 = vpop.xlane.xlu0 %1552 }
 0x41e   :  { %4609 = vrcp.f32 %v1553_v44 }
 0x421   :  { %v1559_v45 = vpop.xlane.xlu0 %1558 }
 0x422   :  { %4611 = vrcp.f32 %v1559_v45  ;;  %2435 = vrot.lane.b32.xlu1 %v4854_v10, %s4767_s2 }
 0x426   :  { %2433 = vrot.lane.b32.xlu1 %v4868_v12, %s4767_s2 }
 0x42b   :  { %v4610_v41 = vpop.eup %4609 }
 0x42c   :  { %v1570_v46 = vmul.f32 %v4610_v41, %v4598_v49 }
 0x42e   :  { %4413 = vmatmul.mubr.msk.f32.vlgmr.msra.gmra.mxu0 %vm74_vm1, %v1570_v46 }
 0x42f   :  { %v4612_v47 = vpop.eup %4611  ;;  %4421 = vmatpush3.msra.mxu0 %v1737_v27  ;;  %4422 = vmatprep.mubr.msk.f32.mxu0 %vm4765_vm0, %v4764_v0 }
 0x430   :  { %v1574_v48 = vmul.f32 %v4612_v47, %v4600_v51  ;;  %4430 = vmatprep.subr.mxu0 %v4764_v0 }
 0x432   :  { %4423 = vmatmul.mubr.msk.f32.vlgmr.msra.gmra.mxu0 %vm74_vm1, %v1574_v48 }
 0x433   :  { %4431 = vmatpush3.msra.mxu0 %v1891_v37  ;;  %4432 = vmatprep.mubr.msk.f32.mxu0 %vm4765_vm0, %v4764_v0 }
 0x434   :  { %4440 = vmatprep.subr.mxu0 %v4764_v0 }
 0x455   :  { %v1556_v49 = vpop.xlane.xlu1 %1555 }
 0x456   :  { %4613 = vrcp.f32 %v1556_v49 }
 0x459   :  { %v1562_v53 = vpop.xlane.xlu1 %1561 }
 0x45a   :  { %4615 = vrcp.f32 %v1562_v53 }
 0x45d   :  { %v1565_v56 = vpop.xlane.xlu0 %1564  ;;  %v2280_v19 = vpop.permute.xlu1 %2279 }
 0x45e   :  { %4617 = vrcp.f32 %v1565_v56 }
 0x461   :  { %v2202_v61 = vpop.permute.xlu0 %2201 }
 0x463   :  { %v4614_v57 = vpop.eup %4613 }
 0x464   :  { %v1572_v60 = vmul.f32 %v4614_v57, %v4602_v20  ;;  %v2278_v20 = vpop.permute.xlu1 %2277 }
 0x465   :  { %v2200_v16 = vpop.permute.xlu0 %2199 }
 0x466   :  { %4418 = vmatmul.mubr.msk.f32.vlgmr.msra.gmra.mxu1 %vm74_vm1, %v1572_v60 }
 0x467   :  { %v4616_v51 = vpop.eup %4615  ;;  %4426 = vmatpush3.msra.mxu1 %v1814_v28  ;;  %4427 = vmatprep.mubr.msk.f32.mxu1 %vm4765_vm0, %v4764_v0 }
 0x468   :  { %4435 = vmatprep.subr.mxu1 %v4764_v0  ;;  %v1576_v13 = vmul.f32 %v4616_v51, %v4604_v22 }
 0x469   :  { %v2358_v17 = vpop.permute.xlu0 %2357 }
 0x46a   :  { %4428 = vmatmul.mubr.msk.f32.vlgmr.msra.gmra.mxu1 %vm74_vm1, %v1576_v13 }
 0x46b   :  { %v4618_v14 = vpop.eup %4617  ;;  %4436 = vmatpush3.msra.mxu1 %v1968_v30  ;;  %4437 = vmatprep.mubr.msk.f32.mxu1 %vm4765_vm0, %v4764_v0 }
 0x46c   :  { %v1578_v15 = vmul.f32 %v4618_v14, %v4606_v25  ;;  %4445 = vmatprep.subr.mxu1 %v4764_v0 }
 0x46d   :  { %v2356_v18 = vpop.permute.xlu0 %2355 }
 0x46e   :  { %4433 = vmatmul.mubr.msk.f32.vlgmr.msra.gmra.mxu0 %vm74_vm1, %v1578_v15 }
 0x46f   :  { %4441 = vmatpush3.xpose.msk.msra.mxu0 %vm74_vm1, %v2046_v42  ;;  %4442 = vmatprep.mubr.msk.f32.mxu0 %vm4765_vm0, %v4764_v0 }
 0x470   :  { %4450 = vmatprep.subr.mxu0 %v4764_v0 }
 0x472   :  { %4443 = vmatmul.mubr.msk.f32.vlgmr.msra.gmra.mxu0 %vm74_vm1, %v2044_v43 }
 0x473   :  { %4451 = vmatpush3.xpose.msk.msra.mxu0 %vm74_vm1, %v2202_v61  ;;  %4452 = vmatprep.mubr.msk.f32.mxu0 %vm4765_vm0, %v4764_v0 }
 0x474   :  { %4460 = vmatprep.subr.mxu0 %v4764_v0 }
 0x476   :  { %4453 = vmatmul.mubr.msk.f32.vlgmr.msra.gmra.mxu0 %vm74_vm1, %v2200_v16 }
 0x477   :  { %4461 = vmatpush3.xpose.msk.msra.mxu0 %vm74_vm1, %v2358_v17  ;;  %4462 = vmatprep.mubr.msk.f32.mxu0 %vm4765_vm0, %v4764_v0 }
 0x478   :  { %4470 = vmatprep.subr.mxu0 %v4764_v0 }
 0x47a   :  { %4463 = vmatmul.mubr.msk.f32.vlgmr.msra.gmra.mxu0 %vm74_vm1, %v2356_v18 }
 0x47b   :  { %4472 = vmatprep.mubr.msk.f32.mxu0 %vm4765_vm0, %v4764_v0 }
 0x49a   :  { %v1568_v21 = vpop.xlane.xlu1 %1567 }
 0x49b   :  { %4619 = vrcp.f32 %v1568_v21 }
 0x49e   :  { %v2436_v25 = vpop.permute.xlu1 %2435 }
 0x4a2   :  { %v2434_v26 = vpop.permute.xlu1 %2433 }
 0x4a8   :  { %v4620_v22 = vpop.eup %4619 }
 0x4a9   :  { %v1580_v24 = vmul.f32 %v4620_v22, %v5063_v38 }
 0x4ab   :  { %4438 = vmatmul.mubr.msk.f32.vlgmr.msra.gmra.mxu1 %vm74_vm1, %v1580_v24 }
 0x4ac   :  { %4446 = vmatpush3.xpose.msk.msra.mxu1 %vm74_vm1, %v5061_v31  ;;  %4447 = vmatprep.mubr.msk.f32.mxu1 %vm4765_vm0, %v4764_v0 }
 0x4ad   :  { %4455 = vmatprep.subr.mxu1 %v4764_v0 }
 0x4af   :  { %4448 = vmatmul.mubr.msk.f32.vlgmr.msra.gmra.mxu1 %vm74_vm1, %v2122_v50 }
 0x4b0   :  { %4456 = vmatpush3.xpose.msk.msra.mxu1 %vm74_vm1, %v2280_v19  ;;  %4457 = vmatprep.mubr.msk.f32.mxu1 %vm4765_vm0, %v4764_v0 }
 0x4b1   :  { %4465 = vmatprep.subr.mxu1 %v4764_v0 }
 0x4b3   :  { %4458 = vmatmul.mubr.msk.f32.vlgmr.msra.gmra.mxu1 %vm74_vm1, %v2278_v20 }
 0x4b4   :  { %4466 = vmatpush3.xpose.msk.msra.mxu1 %vm74_vm1, %v2436_v25  ;;  %4467 = vmatprep.mubr.msk.f32.mxu1 %vm4765_vm0, %v4764_v0 }
 0x4b5   :  { %4475 = vmatprep.subr.mxu1 %v4764_v0 }
 0x4b7   :  { %4468 = vmatmul.mubr.msk.f32.vlgmr.msra.gmra.mxu1 %vm74_vm1, %v2434_v26 }
 0x4b8   :  { %4477 = vmatprep.mubr.msk.f32.mxu1 %vm4765_vm0, %v4764_v0 }
 0x4ee   :  { %v5125_v27 = vpop.f32.mrf.mxu0 }
 0x4f0   :  { %v4414_v28 = vpop.f32.mrf.mxu0 }
 0x4f2   :  { %v5127_v30 = vpop.f32.mrf.mxu0 }
 0x4f4   :  { %v4424_v31 = vpop.f32.mrf.mxu0 }
 0x526   :  { %v5129_v32 = vpop.f32.mrf.mxu1 }
 0x528   :  { %v4419_v34 = vpop.f32.mrf.mxu1 }
 0x52a   :  { %v5131_v35 = vpop.f32.mrf.mxu1 }
 0x52c   :  { %v4429_v37 = vpop.f32.mrf.mxu1 }
 0x52e   :  { %v5133_v38 = vpop.f32.mrf.mxu0 }
 0x530   :  { %v4434_v39 = vpop.f32.mrf.mxu0 }
 0x532   :  { %v2117_v42 = vpop.f32.mrf.mxu0 }
 0x533   :  { %v2511_v43 = vmul.f32 0.35355338, %v2117_v42 }
 0x534   :  { %v4444_v44 = vpop.f32.mrf.mxu0 }
 0x535   :  { %v2517_v45 = vsel %vm74_vm1, %v2511_v43, -inf }
 0x536   :  { %2518 = vmax.xlane.f32.xlu0 %v2517_v45  ;;  %v2273_v41 = vpop.f32.mrf.mxu0 }
 0x537   :  { %v2513_v46 = vmul.f32 0.35355338, %v2273_v41 }
 0x538   :  { %v4454_v47 = vpop.f32.mrf.mxu0 }
 0x539   :  { %v2523_v48 = vsel %vm74_vm1, %v2513_v46, -inf }
 0x53a   :  { %2524 = vmax.xlane.f32.xlu0 %v2523_v48  ;;  %v2429_v50 = vpop.f32.mrf.mxu0 }
 0x53b   :  { %v2515_v15 = vmul.f32 0.35355338, %v2429_v50 }
 0x53c   :  { %v4464_v49 = vpop.f32.mrf.mxu0 }
 0x53d   :  { %v2529_v19 = vsel %vm74_vm1, %v2515_v15, -inf }
 0x56b   :  { %v5137_v53 = vpop.f32.mrf.mxu1 }
 0x56d   :  { %v4439_v56 = vpop.f32.mrf.mxu1 }
 0x56f   :  { %v2195_v57 = vpop.f32.mrf.mxu1 }
 0x570   :  { %v2512_v60 = vmul.f32 0.35355338, %v2195_v57 }
 0x571   :  { %v4449_v51 = vpop.f32.mrf.mxu1 }
 0x572   :  { %v2520_v61 = vsel %vm74_vm1, %v2512_v60, -inf }
 0x573   :  { %2521 = vmax.xlane.f32.xlu1 %v2520_v61  ;;  %v2351_v13 = vpop.f32.mrf.mxu1 }
 0x574   :  { %v2514_v14 = vmul.f32 0.35355338, %v2351_v13 }
 0x575   :  { %v4459_v16 = vpop.f32.mrf.mxu1 }
 0x576   :  { %v2526_v17 = vsel %vm74_vm1, %v2514_v14, -inf }
 0x577   :  { %2527 = vmax.xlane.f32.xlu0 %v2526_v17  ;;  %v2507_v18 = vpop.f32.mrf.mxu1 }
 0x579   :  { %v4469_v20 = vpop.f32.mrf.mxu1 }
 0x57b   :  { %2530 = vmax.xlane.f32.xlu0 %v2529_v19 }
 0x584   :  { %2659 = vrot.lane.b32.xlu1 %v4910_v63, %s4767_s2  ;;  %v2516_v63 = vmul.f32 0.35355338, %v2507_v18 }
 0x586   :  { %v2532_v21 = vsel %vm74_vm1, %v2516_v63, -inf }
 0x588   :  { %2735 = vrot.lane.b32.xlu1 %v4936_v29, %s4767_s2 }
 0x58c   :  { %2811 = vrot.lane.b32.xlu1 %v4943_v33, %s4767_s2 }
 0x590   :  { %2963 = vrot.lane.b32.xlu1 %v4953_v40, %s4767_s2 }
 0x591   :  { %2583 = vrot.lane.b32.xlu0 %v4904_v62, %s4767_s2 }
 0x594   :  { %3119 = vrot.lane.b32.xlu1 %v4818_v2, %s4768_s28 }
 0x595   :  { %2887 = vrot.lane.b32.xlu0 %v4945_v36, %s4767_s2 }
 0x599   :  { %3041 = vrot.lane.b32.xlu0 %v4816_v1, %s4768_s28 }
 0x59d   :  { %3039 = vrot.lane.b32.xlu0 %v4822_v3, %s4768_s28 }
 0x5b8   :  { %2533 = vmax.xlane.f32.xlu1 %v2532_v21 }
 0x5bf   :  { %v2519_v40 = vpop.xlane.xlu0 %2518 }
 0x5c0   :  { %v2535_v22 = vsub.f32 %v2511_v43, %v2519_v40 }
 0x5c2   :  { %v2541_v62 = vmul.f32 1.442695, %v2535_v22 }
 0x5c3   :  { %v2525_v24 = vpop.xlane.xlu0 %2524 }
 0x5c4   :  { %4621 = vpow2.f32 %v2541_v62  ;;  %v2537_v25 = vsub.f32 %v2513_v46, %v2525_v24 }
 0x5c6   :  { %v2545_v2 = vmul.f32 1.442695, %v2537_v25 }
 0x5c8   :  { %4623 = vpow2.f32 %v2545_v2 }
 0x5c9   :  { %3117 = vrot.lane.b32.xlu1 %v4826_v4, %s4768_s28 }
 0x5d1   :  { %v4622_v36 = vpop.eup %4621 }
 0x5d2   :  { %v2553_v1 = vsel %vm74_vm1, %v4622_v36, 0.0 }
 0x5d3   :  { %2554 = vadd.xlane.f32.xlu0 %v2553_v1 }
 0x5d5   :  { %v4624_v3 = vpop.eup %4623 }
 0x5d6   :  { %v2559_v26 = vsel %vm74_vm1, %v4624_v3, 0.0 }
 0x5d7   :  { %2560 = vadd.xlane.f32.xlu0 %v2559_v26 }
 0x5fc   :  { %v2522_v28 = vpop.xlane.xlu1 %2521 }
 0x5fd   :  { %v2536_v31 = vsub.f32 %v2512_v60, %v2522_v28 }
 0x5ff   :  { %v2543_v34 = vmul.f32 1.442695, %v2536_v31 }
 0x600   :  { %v2660_v37 = vpop.permute.xlu1 %2659  ;;  %v2528_v39 = vpop.xlane.xlu0 %2527 }
 0x601   :  { %4625 = vpow2.f32 %v2543_v34  ;;  %v2538_v42 = vsub.f32 %v2514_v14, %v2528_v39  ;;  %4476 = vmatpush3.msra.mxu1 %v2660_v37 }
 0x602   :  { %4485 = vmatprep.subr.mxu1 %v4764_v0 }
 0x603   :  { %v2547_v43 = vmul.f32 1.442695, %v2538_v42 }
 0x604   :  { %v2531_v4 = vpop.xlane.xlu0 %2530  ;;  %v2736_v57 = vpop.permute.xlu1 %2735 }
 0x605   :  { %4627 = vpow2.f32 %v2547_v43  ;;  %v2539_v44 = vsub.f32 %v2515_v15, %v2531_v4 }
 0x607   :  { %v2549_v45 = vmul.f32 1.442695, %v2539_v44 }
 0x608   :  { %v2584_v41 = vpop.permute.xlu0 %2583  ;;  %v2812_v60 = vpop.permute.xlu1 %2811 }
 0x609   :  { %4629 = vpow2.f32 %v2549_v45  ;;  %4471 = vmatpush3.msra.mxu0 %v2584_v41 }
 0x60a   :  { %4480 = vmatprep.subr.mxu0 %v4764_v0 }
 0x60c   :  { %v2964_v51 = vpop.permute.xlu1 %2963  ;;  %v2888_v14 = vpop.permute.xlu0 %2887 }
 0x60e   :  { %v4626_v46 = vpop.eup %4625 }
 0x60f   :  { %v2556_v47 = vsel %vm74_vm1, %v4626_v46, 0.0 }
 0x610   :  { %2557 = vadd.xlane.f32.xlu1 %v2556_v47  ;;  %v5182_v61 = vpop.permute.xlu1 %3119  ;;  %v3042_v15 = vpop.permute.xlu0 %3041 }
 0x612   :  { %v4628_v48 = vpop.eup %4627 }
 0x613   :  { %v2562_v50 = vsel %vm74_vm1, %v4628_v48, 0.0 }
 0x614   :  { %2563 = vadd.xlane.f32.xlu1 %v2562_v50  ;;  %v3040_v16 = vpop.permute.xlu0 %3039 }
 0x616   :  { %v4630_v49 = vpop.eup %4629 }
 0x617   :  { %v2565_v56 = vsel %vm74_vm1, %v4630_v49, 0.0 }
 0x618   :  { %2566 = vadd.xlane.f32.xlu0 %v2565_v56 }
 0x625   :  { %3275 = vrot.lane.b32.xlu1 %v4832_v6, %s4768_s28 }
 0x629   :  { %3273 = vrot.lane.b32.xlu1 %v4849_v9, %s4768_s28 }
 0x62e   :  { %3197 = vrot.lane.b32.xlu0 %v4829_v5, %s4768_s28 }
 0x632   :  { %3195 = vrot.lane.b32.xlu0 %v4842_v7, %s4768_s28 }
 0x636   :  { %3353 = vrot.lane.b32.xlu0 %v4847_v8, %s4768_s28 }
 0x63a   :  { %3351 = vrot.lane.b32.xlu0 %v4862_v11, %s4768_s28 }
 0x641   :  { %v2534_v6 = vpop.xlane.xlu1 %2533 }
 0x642   :  { %v2540_v13 = vsub.f32 %v2516_v63, %v2534_v6 }
 0x644   :  { %v2551_v9 = vmul.f32 1.442695, %v2540_v13 }
 0x646   :  { %4631 = vpow2.f32 %v2551_v9 }
 0x653   :  { %v5184_v5 = vpop.eup %4631 }
 0x654   :  { %v2568_v7 = vsel %vm74_vm1, %v5184_v5, 0.0 }
 0x655   :  { %2569 = vadd.xlane.f32.xlu1 %v2568_v7 }
 0x65c   :  { %v2555_v8 = vpop.xlane.xlu0 %2554 }
 0x65d   :  { %4633 = vrcp.f32 %v2555_v8 }
 0x660   :  { %v2561_v17 = vpop.xlane.xlu0 %2560 }
 0x661   :  { %4635 = vrcp.f32 %v2561_v17 }
 0x666   :  { %3431 = vrot.lane.b32.xlu1 %v4854_v10, %s4768_s28  ;;  %v3118_v10 = vpop.permute.xlu1 %3117 }
 0x66a   :  { %v4634_v11 = vpop.eup %4633  ;;  %3429 = vrot.lane.b32.xlu1 %v4868_v12, %s4768_s28 }
 0x66b   :  { %v2572_v18 = vmul.f32 %v4634_v11, %v4622_v36 }
 0x66d   :  { %4473 = vmatmul.mubr.msk.f32.vlgmr.msra.gmra.mxu0 %vm74_vm1, %v2572_v18 }
 0x66e   :  { %v4636_v19 = vpop.eup %4635  ;;  %4481 = vmatpush3.msra.mxu0 %v2736_v57  ;;  %4482 = vmatprep.mubr.msk.f32.mxu0 %vm4765_vm0, %v4764_v0 }
 0x66f   :  { %v2576_v20 = vmul.f32 %v4636_v19, %v4624_v3  ;;  %4490 = vmatprep.subr.mxu0 %v4764_v0 }
 0x671   :  { %4483 = vmatmul.mubr.msk.f32.vlgmr.msra.gmra.mxu0 %vm74_vm1, %v2576_v20 }
 0x672   :  { %4491 = vmatpush3.msra.mxu0 %v2888_v14  ;;  %4492 = vmatprep.mubr.msk.f32.mxu0 %vm4765_vm0, %v4764_v0 }
 0x673   :  { %4500 = vmatprep.subr.mxu0 %v4764_v0 }
 0x699   :  { %v2558_v12 = vpop.xlane.xlu1 %2557 }
 0x69a   :  { %4637 = vrcp.f32 %v2558_v12 }
 0x69d   :  { %v2564_v63 = vpop.xlane.xlu1 %2563 }
 0x69e   :  { %4639 = vrcp.f32 %v2564_v63 }
 0x6a1   :  { %v2567_v21 = vpop.xlane.xlu0 %2566  ;;  %v3276_v28 = vpop.permute.xlu1 %3275 }
 0x6a2   :  { %4641 = vrcp.f32 %v2567_v21 }
 0x6a5   :  { %v3198_v24 = vpop.permute.xlu0 %3197  ;;  %v3274_v31 = vpop.permute.xlu1 %3273 }
 0x6a7   :  { %v4638_v40 = vpop.eup %4637 }
 0x6a8   :  { %v2574_v22 = vmul.f32 %v4638_v40, %v4626_v46 }
 0x6a9   :  { %v3196_v1 = vpop.permute.xlu0 %3195 }
 0x6aa   :  { %4478 = vmatmul.mubr.msk.f32.vlgmr.msra.gmra.mxu1 %vm74_vm1, %v2574_v22 }
 0x6ab   :  { %v4640_v62 = vpop.eup %4639  ;;  %4486 = vmatpush3.msra.mxu1 %v2812_v60  ;;  %4487 = vmatprep.mubr.msk.f32.mxu1 %vm4765_vm0, %v4764_v0 }
 0x6ac   :  { %4495 = vmatprep.subr.mxu1 %v4764_v0  ;;  %v2578_v25 = vmul.f32 %v4640_v62, %v4628_v48 }
 0x6ad   :  { %v3354_v3 = vpop.permute.xlu0 %3353 }
 0x6ae   :  { %4488 = vmatmul.mubr.msk.f32.vlgmr.msra.gmra.mxu1 %vm74_vm1, %v2578_v25  ;;  %v4669_v25 = vld [vmem:[#allocation7 + $0x8] sm:$0xff] }
 0x6af   :  { %v4642_v2 = vpop.eup %4641  ;;  %4496 = vmatpush3.msra.mxu1 %v2964_v51  ;;  %4497 = vmatprep.mubr.msk.f32.mxu1 %vm4765_vm0, %v4764_v0 }
 0x6b0   :  { %v2580_v36 = vmul.f32 %v4642_v2, %v4630_v49  ;;  %4505 = vmatprep.subr.mxu1 %v4764_v0  ;;  %v4670_v2 = vld [vmem:[#allocation7] sm:$0xff] }
 0x6b1   :  { %v3352_v26 = vpop.permute.xlu0 %3351 }
 0x6b2   :  { %4493 = vmatmul.mubr.msk.f32.vlgmr.msra.gmra.mxu0 %vm74_vm1, %v2580_v36 }
 0x6b3   :  { %4501 = vmatpush3.xpose.msk.msra.mxu0 %vm74_vm1, %v3042_v15  ;;  %4502 = vmatprep.mubr.msk.f32.mxu0 %vm4765_vm0, %v4764_v0 }
 0x6b4   :  { %4510 = vmatprep.subr.mxu0 %v4764_v0 }
 0x6b6   :  { %4503 = vmatmul.mubr.msk.f32.vlgmr.msra.gmra.mxu0 %vm74_vm1, %v3040_v16 }
 0x6b7   :  { %4511 = vmatpush3.xpose.msk.msra.mxu0 %vm74_vm1, %v3198_v24  ;;  %4512 = vmatprep.mubr.msk.f32.mxu0 %vm4765_vm0, %v4764_v0 }
 0x6b8   :  { %4520 = vmatprep.subr.mxu0 %v4764_v0 }
 0x6ba   :  { %4513 = vmatmul.mubr.msk.f32.vlgmr.msra.gmra.mxu0 %vm74_vm1, %v3196_v1 }
 0x6bb   :  { %4521 = vmatpush3.xpose.msk.msra.mxu0 %vm74_vm1, %v3354_v3  ;;  %4522 = vmatprep.mubr.msk.f32.mxu0 %vm4765_vm0, %v4764_v0 }
 0x6bc   :  { %4530 = vmatprep.subr.mxu0 %v4764_v0 }
 0x6be   :  { %4523 = vmatmul.mubr.msk.f32.vlgmr.msra.gmra.mxu0 %vm74_vm1, %v3352_v26 }
 0x6bf   :  { %4532 = vmatprep.mubr.msk.f32.mxu0 %vm4765_vm0, %v4764_v0 }
 0x6de   :  { %v2570_v34 = vpop.xlane.xlu1 %2569 }
 0x6df   :  { %4643 = vrcp.f32 %v2570_v34 }
 0x6e2   :  { %v3432_v42 = vpop.permute.xlu1 %3431 }
 0x6e6   :  { %v3430_v43 = vpop.permute.xlu1 %3429 }
 0x6ec   :  { %v4644_v37 = vpop.eup %4643 }
 0x6ed   :  { %v2582_v39 = vmul.f32 %v4644_v37, %v5184_v5 }
 0x6ef   :  { %4498 = vmatmul.mubr.msk.f32.vlgmr.msra.gmra.mxu1 %vm74_vm1, %v2582_v39 }
 0x6f0   :  { %4506 = vmatpush3.xpose.msk.msra.mxu1 %vm74_vm1, %v5182_v61  ;;  %4507 = vmatprep.mubr.msk.f32.mxu1 %vm4765_vm0, %v4764_v0 }
 0x6f1   :  { %4515 = vmatprep.subr.mxu1 %v4764_v0 }
 0x6f3   :  { %4508 = vmatmul.mubr.msk.f32.vlgmr.msra.gmra.mxu1 %vm74_vm1, %v3118_v10 }
 0x6f4   :  { %4516 = vmatpush3.xpose.msk.msra.mxu1 %vm74_vm1, %v3276_v28  ;;  %4517 = vmatprep.mubr.msk.f32.mxu1 %vm4765_vm0, %v4764_v0 }
 0x6f5   :  { %4525 = vmatprep.subr.mxu1 %v4764_v0 }
 0x6f7   :  { %4518 = vmatmul.mubr.msk.f32.vlgmr.msra.gmra.mxu1 %vm74_vm1, %v3274_v31 }
 0x6f8   :  { %4526 = vmatpush3.xpose.msk.msra.mxu1 %vm74_vm1, %v3432_v42  ;;  %4527 = vmatprep.mubr.msk.f32.mxu1 %vm4765_vm0, %v4764_v0 }
 0x6f9   :  { %4535 = vmatprep.subr.mxu1 %v4764_v0 }
 0x6fb   :  { %4528 = vmatmul.mubr.msk.f32.vlgmr.msra.gmra.mxu1 %vm74_vm1, %v3430_v43 }
 0x6fc   :  { %4537 = vmatprep.mubr.msk.f32.mxu1 %vm4765_vm0, %v4764_v0 }
 0x72d   :  { %v5246_v4 = vpop.f32.mrf.mxu0 }
 0x72f   :  { %v4474_v44 = vpop.f32.mrf.mxu0 }
 0x731   :  { %v5248_v45 = vpop.f32.mrf.mxu0 }
 0x733   :  { %v4484_v41 = vpop.f32.mrf.mxu0 }
 0x76a   :  { %v5250_v46 = vpop.f32.mrf.mxu1 }
 0x76c   :  { %v4479_v47 = vpop.f32.mrf.mxu1 }
 0x76e   :  { %v5252_v48 = vpop.f32.mrf.mxu1 }
 0x770   :  { %v4489_v50 = vpop.f32.mrf.mxu1 }
 0x772   :  { %v5254_v49 = vpop.f32.mrf.mxu0 }
 0x774   :  { %v4494_v56 = vpop.f32.mrf.mxu0 }
 0x776   :  { %v3113_v57 = vpop.f32.mrf.mxu0 }
 0x777   :  { %v3507_v60 = vmul.f32 0.35355338, %v3113_v57 }
 0x778   :  { %v4504_v51 = vpop.f32.mrf.mxu0 }
 0x779   :  { %v3513_v61 = vsel %vm74_vm1, %v3507_v60, -inf }
 0x77a   :  { %3514 = vmax.xlane.f32.xlu0 %v3513_v61  ;;  %v3269_v6 = vpop.f32.mrf.mxu0 }
 0x77b   :  { %v3509_v13 = vmul.f32 0.35355338, %v3269_v6 }
 0x77c   :  { %v4514_v9 = vpop.f32.mrf.mxu0 }
 0x77d   :  { %v3519_v14 = vsel %vm74_vm1, %v3509_v13, -inf }
 0x77e   :  { %3520 = vmax.xlane.f32.xlu0 %v3519_v14  ;;  %v3425_v15 = vpop.f32.mrf.mxu0 }
 0x77f   :  { %v3511_v10 = vmul.f32 0.35355338, %v3425_v15 }
 0x780   :  { %v4524_v5 = vpop.f32.mrf.mxu0 }
 0x781   :  { %v3525_v22 = vsel %vm74_vm1, %v3511_v10, -inf }
 0x7af   :  { %v5258_v7 = vpop.f32.mrf.mxu1 }
 0x7b1   :  { %v4499_v16 = vpop.f32.mrf.mxu1 }
 0x7b3   :  { %v3191_v8 = vpop.f32.mrf.mxu1 }
 0x7b4   :  { %v3508_v17 = vmul.f32 0.35355338, %v3191_v8 }
 0x7b5   :  { %v4509_v11 = vpop.f32.mrf.mxu1 }
 0x7b6   :  { %v3516_v18 = vsel %vm74_vm1, %v3508_v17, -inf }
 0x7b7   :  { %3517 = vmax.xlane.f32.xlu1 %v3516_v18  ;;  %v3347_v19 = vpop.f32.mrf.mxu1  ;;  %v4671_v18 = vld [vmem:[#allocation7 + $0x28] sm:$0xff] }
 0x7b8   :  { %v3510_v20 = vmul.f32 0.35355338, %v3347_v19  ;;  %v4672_v19 = vld [vmem:[#allocation7 + $0x20] sm:$0xff] }
 0x7b9   :  { %v4519_v12 = vpop.f32.mrf.mxu1 }
 0x7ba   :  { %v3522_v63 = vsel %vm74_vm1, %v3510_v20, -inf }
 0x7bb   :  { %v3503_v21 = vpop.f32.mrf.mxu1  ;;  %3523 = vmax.xlane.f32.xlu0 %v3522_v63 }
 0x7bc   :  { %v3512_v40 = vmul.f32 0.35355338, %v3503_v21 }
 0x7bd   :  { %v4529_v62 = vpop.f32.mrf.mxu1 }
 0x7be   :  { %v3528_v24 = vsel %vm74_vm1, %v3512_v40, -inf }
 0x7bf   :  { %3529 = vmax.xlane.f32.xlu1 %v3528_v24  ;;  %3526 = vmax.xlane.f32.xlu0 %v3525_v22 }
 0x7d0   :  { %3655 = vrot.lane.b32.xlu1 %v4669_v25, %s4768_s28 }
 0x7d4   :  { %3731 = vrot.lane.b32.xlu1 %v4936_v29, %s4768_s28 }
 0x7d5   :  { %3579 = vrot.lane.b32.xlu0 %v4670_v2, %s4768_s28 }
 0x7d8   :  { %3807 = vrot.lane.b32.xlu1 %v4943_v33, %s4768_s28 }
 0x803   :  { %v3515_v36 = vpop.xlane.xlu0 %3514 }
 0x804   :  { %v3531_v1 = vsub.f32 %v3507_v60, %v3515_v36 }
 0x806   :  { %v3537_v3 = vmul.f32 1.442695, %v3531_v1 }
 0x807   :  { %v3521_v26 = vpop.xlane.xlu0 %3520 }
 0x808   :  { %4645 = vpow2.f32 %v3537_v3  ;;  %v3533_v28 = vsub.f32 %v3509_v13, %v3521_v26 }
 0x80a   :  { %v3541_v31 = vmul.f32 1.442695, %v3533_v28 }
 0x80c   :  { %4647 = vpow2.f32 %v3541_v31 }
 0x815   :  { %v4646_v34 = vpop.eup %4645 }
 0x816   :  { %v3549_v37 = vsel %vm74_vm1, %v4646_v34, 0.0 }
 0x817   :  { %3550 = vadd.xlane.f32.xlu0 %v3549_v37 }
 0x819   :  { %v5271_v39 = vpop.eup %4647 }
 0x81a   :  { %v3555_v29 = vsel %vm74_vm1, %v5271_v39, 0.0 }
 0x81b   :  { %3556 = vadd.xlane.f32.xlu0 %v3555_v29 }
 0x840   :  { %v3518_v42 = vpop.xlane.xlu1 %3517 }
 0x841   :  { %v3532_v33 = vsub.f32 %v3508_v17, %v3518_v42 }
 0x843   :  { %v3539_v43 = vmul.f32 1.442695, %v3532_v33 }
 0x844   :  { %v3524_v44 = vpop.xlane.xlu0 %3523 }
 0x845   :  { %4649 = vpow2.f32 %v3539_v43  ;;  %v3534_v41 = vsub.f32 %v3510_v20, %v3524_v44 }
 0x847   :  { %v3543_v47 = vmul.f32 1.442695, %v3534_v41 }
 0x848   :  { %v3530_v50 = vpop.xlane.xlu1 %3529  ;;  %v3527_v56 = vpop.xlane.xlu0 %3526 }
 0x849   :  { %4651 = vpow2.f32 %v3543_v47  ;;  %v3536_v57 = vsub.f32 %v3512_v40, %v3530_v50  ;;  %v3535_v60 = vsub.f32 %v3511_v10, %v3527_v56 }
 0x84b   :  { %v3547_v51 = vmul.f32 1.442695, %v3536_v57  ;;  %v3545_v61 = vmul.f32 1.442695, %v3535_v60 }
 0x84c   :  { %v3656_v6 = vpop.permute.xlu1 %3655  ;;  %v3580_v13 = vpop.permute.xlu0 %3579 }
 0x84d   :  { %4653 = vpow2.f32 %v3547_v51  ;;  %4536 = vmatpush3.msra.mxu1 %v3656_v6  ;;  %4531 = vmatpush3.msra.mxu0 %v3580_v13 }
 0x84e   :  { %4655 = vpow2.f32 %v3545_v61  ;;  %4540 = vmatprep.subr.mxu0 %v4764_v0  ;;  %4545 = vmatprep.subr.mxu1 %v4764_v0 }
 0x852   :  { %v4650_v9 = vpop.eup %4649 }
 0x853   :  { %v3552_v14 = vsel %vm74_vm1, %v4650_v9, 0.0 }
 0x854   :  { %3553 = vadd.xlane.f32.xlu1 %v3552_v14 }
 0x856   :  { %v4652_v15 = vpop.eup %4651 }
 0x857   :  { %v3558_v5 = vsel %vm74_vm1, %v4652_v15, 0.0 }
 0x858   :  { %3559 = vadd.xlane.f32.xlu1 %v3558_v5 }
 0x85a   :  { %v5279_v16 = vpop.eup %4653 }
 0x85b   :  { %v5281_v8 = vpop.eup %4655  ;;  %v3564_v17 = vsel %vm74_vm1, %v5279_v16, 0.0 }
 0x85c   :  { %3565 = vadd.xlane.f32.xlu1 %v3564_v17  ;;  %v3561_v11 = vsel %vm74_vm1, %v5281_v8, 0.0 }
 0x85d   :  { %3562 = vadd.xlane.f32.xlu0 %v3561_v11 }
 0x86d   :  { %3959 = vrot.lane.b32.xlu1 %v4671_v18, %s4768_s28 }
 0x871   :  { %4043 = vrot.lane.b32.xlu1 %v5129_v32, %s4762_s18 }
 0x873   :  { %3883 = vrot.lane.b32.xlu0 %v4672_v19, %s4768_s28 }
 0x875   :  { %4047 = vrot.lane.b32.xlu1 %v5131_v35, %s4762_s18 }
 0x877   :  { %4041 = vrot.lane.b32.xlu0 %v5125_v27, %s4762_s18 }
 0x879   :  { %4051 = vrot.lane.b32.xlu1 %v5137_v53, %s4762_s18  ;;  %v3732_v53 = vpop.permute.xlu1 %3731 }
 0x87b   :  { %4045 = vrot.lane.b32.xlu0 %v5127_v30, %s4762_s18 }
 0x87d   :  { %4067 = vrot.lane.b32.xlu1 %v5250_v46, %s4769_s29 }
 0x87f   :  { %4049 = vrot.lane.b32.xlu0 %v5133_v38, %s4762_s18 }
 0x881   :  { %4071 = vrot.lane.b32.xlu1 %v5252_v48, %s4769_s29 }
 0x883   :  { %4065 = vrot.lane.b32.xlu0 %v5246_v4, %s4769_s29 }
 0x885   :  { %4075 = vrot.lane.b32.xlu1 %v5258_v7, %s4769_s29 }
 0x887   :  { %4069 = vrot.lane.b32.xlu0 %v5248_v45, %s4769_s29  ;;  %v3808_v45 = vpop.permute.xlu1 %3807 }
 0x88b   :  { %4073 = vrot.lane.b32.xlu0 %v5254_v49, %s4769_s29 }
 0x8a0   :  { %v3551_v27 = vpop.xlane.xlu0 %3550 }
 0x8a1   :  { %4657 = vrcp.f32 %v3551_v27 }
 0x8a4   :  { %v3557_v32 = vpop.xlane.xlu0 %3556 }
 0x8a5   :  { %4659 = vrcp.f32 %v3557_v32 }
 0x8ae   :  { %v4658_v30 = vpop.eup %4657 }
 0x8af   :  { %v3568_v35 = vmul.f32 %v4658_v30, %v4646_v34 }
 0x8b1   :  { %4533 = vmatmul.mubr.msk.f32.vlgmr.msra.gmra.mxu0 %vm74_vm1, %v3568_v35 }
 0x8b2   :  { %v4660_v38 = vpop.eup %4659  ;;  %4541 = vmatpush3.msra.mxu0 %v3732_v53  ;;  %4542 = vmatprep.mubr.msk.f32.mxu0 %vm4765_vm0, %v4764_v0 }
 0x8b3   :  { %v3572_v4 = vmul.f32 %v4660_v38, %v5271_v39  ;;  %4550 = vmatprep.subr.mxu0 %v4764_v0 }
 0x8b5   :  { %4543 = vmatmul.mubr.msk.f32.vlgmr.msra.gmra.mxu0 %vm74_vm1, %v3572_v4 }
 0x8b6   :  { %4552 = vmatprep.mubr.msk.f32.mxu0 %vm4765_vm0, %v4764_v0 }
 0x8dd   :  { %v3554_v46 = vpop.xlane.xlu1 %3553 }
 0x8de   :  { %4661 = vrcp.f32 %v3554_v46 }
 0x8e1   :  { %v3560_v48 = vpop.xlane.xlu1 %3559 }
 0x8e2   :  { %4663 = vrcp.f32 %v3560_v48 }
 0x8e5   :  { %v3566_v49 = vpop.xlane.xlu1 %3565 }
 0x8e6   :  { %4665 = vrcp.f32 %v3566_v49  ;;  %v3563_v7 = vpop.xlane.xlu0 %3562 }
 0x8e7   :  { %4667 = vrcp.f32 %v3563_v7 }
 0x8e9   :  { %v3960_v22 = vpop.permute.xlu1 %3959 }
 0x8ea   :  { %v3884_v20 = vpop.permute.xlu0 %3883 }
 0x8eb   :  { %v4662_v10 = vpop.eup %4661  ;;  %4551 = vmatpush3.msra.mxu0 %v3884_v20 }
 0x8ec   :  { %v3570_v12 = vmul.f32 %v4662_v10, %v4650_v9 }
 0x8ed   :  { %v4044_v14 = vpop.permute.xlu1 %4043 }
 0x8ee   :  { %v4042_v63 = vpop.permute.xlu0 %4041  ;;  %4538 = vmatmul.mubr.msk.f32.vlgmr.msra.gmra.mxu1 %vm74_vm1, %v3570_v12  ;;  %v4108_v17 = vsel %vm74_vm1, %v5006_v54, %v4044_v14 }
 0x8ef   :  { %v4664_v21 = vpop.eup %4663  ;;  %4546 = vmatpush3.msra.mxu1 %v3808_v45  ;;  %4547 = vmatprep.mubr.msk.f32.mxu1 %vm4765_vm0, %v4764_v0  ;;  %v4107_v56 = vsel %vm74_vm1, %v5004_v52, %v4042_v63 }
 0x8f0   :  { %v3574_v40 = vmul.f32 %v4664_v21, %v4652_v15  ;;  %4555 = vmatprep.subr.mxu1 %v4764_v0 }
 0x8f1   :  { %v4048_v52 = vpop.permute.xlu1 %4047 }
 0x8f2   :  { %v4046_v62 = vpop.permute.xlu0 %4045  ;;  %4548 = vmatmul.mubr.msk.f32.vlgmr.msra.gmra.mxu1 %vm74_vm1, %v3574_v40  ;;  %v4110_v19 = vsel %vm74_vm1, %v5010_v58, %v4048_v52 }
 0x8f3   :  { %v4666_v24 = vpop.eup %4665  ;;  %4556 = vmatpush3.msra.mxu1 %v3960_v22  ;;  %4557 = vmatprep.mubr.msk.f32.mxu1 %vm4765_vm0, %v4764_v0  ;;  %v4109_v61 = vsel %vm74_vm1, %v5008_v55, %v4046_v62 }
 0x8f4   :  { %v4668_v25 = vpop.eup %4667  ;;  %v3578_v2 = vmul.f32 %v4666_v24, %v5279_v16 }
 0x8f5   :  { %v3576_v36 = vmul.f32 %v4668_v25, %v5281_v8  ;;  %v4052_v15 = vpop.permute.xlu1 %4051 }
 0x8f6   :  { %v4050_v1 = vpop.permute.xlu0 %4049  ;;  %4558 = vmatmul.mubr.msk.f32.vlgmr.msra.gmra.mxu1 %vm74_vm1, %v3578_v2  ;;  %v4112_v54 = vsel %vm74_vm1, %v5016_v23, %v4052_v15 }
 0x8f7   :  { %4553 = vmatmul.mubr.msk.f32.vlgmr.msra.gmra.mxu0 %vm74_vm1, %v3576_v36  ;;  %v4111_v28 = vsel %vm74_vm1, %v5012_v59, %v4050_v1 }
 0x8f9   :  { %v4068_v5 = vpop.permute.xlu1 %4067 }
 0x8fa   :  { %v4066_v3 = vpop.permute.xlu0 %4065  ;;  %v4115_v11 = vsel %vm4113_vm2, %v4108_v17, %v4068_v5 }
 0x8fb   :  { %v4114_v57 = vsel %vm4113_vm2, %v4107_v56, %v4066_v3 }
 0x8fd   :  { %v4072_v16 = vpop.permute.xlu1 %4071 }
 0x8fe   :  { %v4070_v26 = vpop.permute.xlu0 %4069  ;;  %v4117_v27 = vsel %vm4113_vm2, %v4110_v19, %v4072_v16 }
 0x8ff   :  { %v4116_v6 = vsel %vm4113_vm2, %v4109_v61, %v4070_v26 }
 0x901   :  { %v4076_v8 = vpop.permute.xlu1 %4075 }
 0x902   :  { %v4074_v31 = vpop.permute.xlu0 %4073  ;;  %v4119_v35 = vsel %vm4113_vm2, %v4112_v54, %v4076_v8 }
 0x903   :  { %v4118_v34 = vsel %vm4113_vm2, %v4111_v28, %v4074_v31 }
 0x971   :  { %v3651_v0 = vpop.f32.mrf.mxu0 }
 0x972   :  { %4089 = vrot.lane.b32.xlu0 %v3651_v0, %s4770_s30 }
 0x973   :  { %v4534_v37 = vpop.f32.mrf.mxu0 }
 0x975   :  { %v3803_v39 = vpop.f32.mrf.mxu0 }
 0x976   :  { %4093 = vrot.lane.b32.xlu0 %v3803_v39, %s4770_s30 }
 0x977   :  { %v4544_v29 = vpop.f32.mrf.mxu0 }
 0x9ae   :  { %v3727_v42 = vpop.f32.mrf.mxu1 }
 0x9af   :  { %4091 = vrot.lane.b32.xlu1 %v3727_v42, %s4770_s30 }
 0x9b0   :  { %v4539_v33 = vpop.f32.mrf.mxu1 }
 0x9b2   :  { %v3879_v43 = vpop.f32.mrf.mxu1 }
 0x9b3   :  { %4095 = vrot.lane.b32.xlu1 %v3879_v43, %s4770_s30 }
 0x9b4   :  { %v4549_v44 = vpop.f32.mrf.mxu1 }
 0x9b6   :  { %v4031_v41 = vpop.f32.mrf.mxu1 }
 0x9b7   :  { %v3955_v47 = vpop.f32.mrf.mxu0  ;;  %4099 = vrot.lane.b32.xlu1 %v4031_v41, %s4770_s30 }
 0x9b8   :  { %4097 = vrot.lane.b32.xlu0 %v3955_v47, %s4770_s30  ;;  %v4559_v59 = vpop.f32.mrf.mxu1 }
 0x9b9   :  { %v4554_v50 = vpop.f32.mrf.mxu0 }
 0x9e4   :  { %v4090_v60 = vpop.permute.xlu0 %4089 }
 0x9e5   :  { %v4121_v51 = vsel %vm4120_vm3, %v4114_v57, %v4090_v60 }
 0x9e6   :  { %4128 = vst.msk [vmem:[#allocation8] sm:$0xff] %vm4127_vm4, %v4121_v51 }
 0x9e8   :  { %v4094_v13 = vpop.permute.xlu0 %4093 }
 0x9e9   :  { %v4123_v9 = vsel %vm4120_vm3, %v4116_v6, %v4094_v13 }
 0x9ea   :  { %4130 = vst.msk [vmem:[#allocation8 + $0x10] sm:$0xff] %vm4127_vm4, %v4123_v9 }
 0xa21   :  { %v4092_v18 = vpop.permute.xlu1 %4091 }
 0xa22   :  { %v4122_v55 = vsel %vm4120_vm3, %v4115_v11, %v4092_v18 }
 0xa23   :  { %4129 = vst.msk [vmem:[#allocation8 + $0x8] sm:$0xff] %vm4127_vm4, %v4122_v55 }
 0xa25   :  { %v4096_v32 = vpop.permute.xlu1 %4095 }
 0xa26   :  { %v4124_v30 = vsel %vm4120_vm3, %v4117_v27, %v4096_v32 }
 0xa27   :  { %4131 = vst.msk [vmem:[#allocation8 + $0x18] sm:$0xff] %vm4127_vm4, %v4124_v30 }
 0xa29   :  { %v4100_v53 = vpop.permute.xlu1 %4099 }
 0xa2a   :  { %v4126_v38 = vsel %vm4120_vm3, %v4119_v35, %v4100_v53  ;;  %v4098_v4 = vpop.permute.xlu0 %4097 }
 0xa2b   :  { %4133 = vst.msk [vmem:[#allocation8 + $0x28] sm:$0xff] %vm4127_vm4, %v4126_v38  ;;  %v4125_v58 = vsel %vm4120_vm3, %v4118_v34, %v4098_v4 }
 0xa2c   :  { %4132 = vst.msk [vmem:[#allocation8 + $0x20] sm:$0xff] %vm4127_vm4, %v4125_v58 }
 0xa2d   :  { %4744 = shalt.err (!%p4741_p5)
}
 0xa2e   :  { %4145 = dma.vmem_to_hbm [thread:$0]  %s4140_s5, 768, %s5365_s3, [#allocation4], %s4761_s17, %s4761_s17, %s4762_s18  }
 0xa2f   :  { %4757 = dma.done.wait [#allocation4], 768  }
 0xa30   :  { %4758 = vsyncadd [#allocation4], 4294966528 }
 0xa31   :  { %4149 = vsyncpa [#allocation3], 1 }
 0xa32   :  { %4150 = vsyncpa [#allocation6], 1 }
 0xa33   :  { %4151 = vsyncpa [#allocation4], 1 }

</bundles_post_ra>
